<compile_context>
chip_gen: v7x
topology: tpu7x:2x2x1
jax: 0.10.0
libtpu: 0.0.40
codegen_flags: <defaults>
</compile_context>

<pallas_src>
import functools

import jax
import jax.numpy as jnp
import numpy as np
from jax.experimental import pallas as pl
from jax.experimental.pallas import tpu as pltpu

BN_EPS = 1e-5
LANE = 128
SUBLANE = 8


def round_up(x, m):
    return ((x + m - 1) // m) * m


def pad2d(a, rows, cols, val=0.0):
    return jnp.pad(a, ((0, rows - a.shape[0]), (0, cols - a.shape[1])),
                   constant_values=val)


# ---------------------------------------------------------------------------
# Pallas kernel: fused GNN stack + pooling + prediction head
#   grid = (num_layers,)  -- layer axis carries the node state in nr_ref
# ---------------------------------------------------------------------------
def gnn_stack_kernel(h0_ref, e_ref, g_ref, s_ref, nmask_ref, pool_ref, invc_ref,
                     wp_ref, bp_ref,                       # layer-invariant (resident)
                     vec_ref, w1_ref, w2_ref,              # per-layer (streamed)
                     nr_ref, pred_ref):                    # outputs
    layer = pl.program_id(0)
    last = pl.num_programs(0) - 1

    # --- node state carried directly in the node-representation output ---
    @pl.when(layer == 0)
    def _():
        nr_ref[...] = h0_ref[...]

    h = nr_ref[...]                                        # [N_pad, D_pad]
    d_pad = h.shape[1]

    nmask8 = nmask_ref[...]                                # [8, N_pad]; row 0 = 1/N_real

    # --- per-layer vector params packed into one [8, H_pad] tile ---
    vec = vec_ref[...]
    scale = vec[0:1, :d_pad]                               # (1 + eps)
    b1, g1, be1 = vec[1:2, :], vec[2:3, :], vec[3:4, :]
    b2, g2, be2 = vec[4:5, :d_pad], vec[5:6, :d_pad], vec[6:7, :d_pad]

    # --- message passing: gather / scatter-add as one-hot matmuls (MXU) ---
    xj = jnp.dot(g_ref[...], h, preferred_element_type=jnp.float32)    # [E, D]
    msg = jnp.maximum(xj + e_ref[...], 0.0)                            # relu(x_j + e)
    aggr = jnp.dot(s_ref[...], msg, preferred_element_type=jnp.float32)  # [N, D]

    z = scale * h + aggr                                               # (1+eps)*x + aggr

    def masked_bn(u, gamma, beta):
        # Batch stats over real nodes only, computed on the MXU.
        # Two-pass (mean, then var of centered) to avoid E[u^2]-E[u]^2 cancellation.
        mean = jnp.dot(nmask8, u, preferred_element_type=jnp.float32)[0:1, :]
        centered = u - mean
        var = jnp.dot(nmask8, centered * centered,
                      preferred_element_type=jnp.float32)[0:1, :]
        return centered * jax.lax.rsqrt(var + BN_EPS) * gamma + beta

    # --- GIN MLP: Linear(D,2D) -> BN(2D) -> ReLU -> Linear(2D,D) ---
    u = jnp.dot(z, w1_ref[...], preferred_element_type=jnp.float32) + b1
    u = jnp.maximum(masked_bn(u, g1, be1), 0.0)
    v = jnp.dot(u, w2_ref[...], preferred_element_type=jnp.float32) + b2

    # --- GNN-level BN(D) + ReLU (dropout p=0 -> identity) ---
    h_new = jnp.maximum(masked_bn(v, g2, be2), 0.0)
    nr_ref[...] = h_new

    # --- fused global mean pool + prediction Linear on the last layer ---
    @pl.when(layer == last)
    def _():
        pooled = jnp.dot(pool_ref[...], h_new,
                         preferred_element_type=jnp.float32) * invc_ref[...]   # [G, D]
        pred_ref[...] = (jnp.dot(pooled, wp_ref[...],
                                 preferred_element_type=jnp.float32) + bp_ref[...])


def run_gnn_stack(h0, edge_emb, gmat, smat, nmask8, pool_oh, inv_counts,
                  wp, bp, vec, w1, w2):
    L, _, H_pad = w1.shape
    N_pad, D_pad = h0.shape
    E_pad = edge_emb.shape[0]
    G_pad = pool_oh.shape[0]
    T_pad = wp.shape[1]

    const2 = lambda l: (0, 0)        # layer-invariant tensors stay VMEM-resident
    per_layer = lambda l: (l, 0, 0)  # stream one layer's params per grid step

    return pl.pallas_call(
        gnn_stack_kernel,
        out_shape=(jax.ShapeDtypeStruct((N_pad, D_pad), jnp.float32),   # node rep
                   jax.ShapeDtypeStruct((G_pad, T_pad), jnp.float32)),  # graph pred
        grid=(L,),
        in_specs=[
            pl.BlockSpec((N_pad, D_pad), const2),           # h0
            pl.BlockSpec((E_pad, D_pad), const2),           # edge embeddings
            pl.BlockSpec((E_pad, N_pad), const2),           # gather one-hot
            pl.BlockSpec((N_pad, E_pad), const2),           # scatter one-hot
            pl.BlockSpec((SUBLANE, N_pad), const2),         # BN mask (row 0 = 1/N)
            pl.BlockSpec((G_pad, N_pad), const2),           # pooling one-hot
            pl.BlockSpec((G_pad, 1), const2),               # 1 / graph node counts
            pl.BlockSpec((D_pad, T_pad), const2),           # prediction weight
            pl.BlockSpec((1, T_pad), const2),               # prediction bias
            pl.BlockSpec((None, SUBLANE, H_pad), per_layer),  # packed vector params
            pl.BlockSpec((None, D_pad, H_pad), per_layer),    # w1
            pl.BlockSpec((None, H_pad, D_pad), per_layer),    # w2
        ],
        out_specs=[pl.BlockSpec((N_pad, D_pad), const2),
                   pl.BlockSpec((G_pad, T_pad), const2)],
        compiler_params=pltpu.CompilerParams(
            dimension_semantics=("arbitrary",),             # layer axis carries state
            vmem_limit_bytes=32 * 1024 * 1024),             # toy footprint ~1 MiB
    )(h0, edge_emb, gmat, smat, nmask8, pool_oh, inv_counts, wp, bp, vec, w1, w2)


# ---------------------------------------------------------------------------
# Parameter construction (mirrors module __init__ shapes)
# ---------------------------------------------------------------------------
def linear_init(key, fan_in, fan_out):
    bound = 1.0 / np.sqrt(fan_in)
    kw, kb = jax.random.split(key)
    w = jax.random.uniform(kw, (fan_in, fan_out), jnp.float32, -bound, bound)
    b = jax.random.uniform(kb, (1, fan_out), jnp.float32, -bound, bound)
    return w, b


def build_params(key, num_layers, emb_dim, num_tasks,
                 atom_vocabs=(5, 7), bond_vocabs=(4, 3)):
    keys = jax.random.split(key, 4 + num_layers)
    params = {}
    params["atom_emb"] = [
        0.1 * jax.random.normal(jax.random.fold_in(keys[0], i), (v, emb_dim), jnp.float32)
        for i, v in enumerate(atom_vocabs)]
    params["bond_emb"] = [
        0.1 * jax.random.normal(jax.random.fold_in(keys[1], i), (v, emb_dim), jnp.float32)
        for i, v in enumerate(bond_vocabs)]
    wp, bp = linear_init(keys[2], emb_dim, num_tasks)
    params["pred_w"], params["pred_b"] = wp, bp

    layers = []
    for l in range(num_layers):
        k1, k2, k3 = jax.random.split(keys[4 + l], 3)
        w1, b1 = linear_init(k1, emb_dim, 2 * emb_dim)
        w2, b2 = linear_init(k2, 2 * emb_dim, emb_dim)
        kg1, kb1, kg2, kb2 = jax.random.split(k3, 4)
        layers.append(dict(
            # module init is eps=0 / gamma=1 / beta=0; use perturbed ("trained")
            # values so the test actually validates their plumbing.
            eps=jnp.float32(0.01 * (l + 1)),
            w1=w1, b1=b1,
            bn1_g=1.0 + 0.1 * jax.random.normal(kg1, (1, 2 * emb_dim), jnp.float32),
            bn1_b=0.1 * jax.random.normal(kb1, (1, 2 * emb_dim), jnp.float32),
            w2=w2, b2=b2,
            bn2_g=1.0 + 0.1 * jax.random.normal(kg2, (1, emb_dim), jnp.float32),
            bn2_b=0.1 * jax.random.normal(kb2, (1, emb_dim), jnp.float32),
        ))
    params["layers"] = layers
    return params


def pad_and_stack_params(params):
    """Lane-pad feature dims, stack per-layer weights, pack vector params."""
    D = params["pred_w"].shape[0]
    T = params["pred_w"].shape[1]
    D_pad = round_up(D, LANE)
    H_pad = round_up(2 * D, LANE)
    T_pad = round_up(T, LANE)
    layers = params["layers"]

    def pad_row(v, fill=0.0):
        v = jnp.asarray(v, jnp.float32).reshape(-1)
        return jnp.pad(v, (0, H_pad - v.shape[0]), constant_values=fill)

    vec = jnp.stack([
        jnp.stack([
            pad_row(jnp.full((D,), 1.0 + lp["eps"], jnp.float32)),  # 0: (1+eps) scale
            pad_row(lp["b1"]),                                       # 1: b1
            pad_row(lp["bn1_g"], 1.0),                               # 2: bn1 gamma
            pad_row(lp["bn1_b"]),                                    # 3: bn1 beta
            pad_row(lp["b2"]),                                       # 4: b2  (first D lanes)
            pad_row(lp["bn2_g"], 1.0),                               # 5: bn2 gamma
            pad_row(lp["bn2_b"]),                                    # 6: bn2 beta
            jnp.zeros((H_pad,), jnp.float32),                        # 7: pad
        ]) for lp in layers])                                        # [L, 8, H_pad]

    return dict(
        vec=vec,
        w1=jnp.stack([pad2d(lp["w1"], D_pad, H_pad) for lp in layers]),   # [L, D_pad, H_pad]
        w2=jnp.stack([pad2d(lp["w2"], H_pad, D_pad) for lp in layers]),   # [L, H_pad, D_pad]
        pred_w=pad2d(params["pred_w"], D_pad, T_pad),
        pred_b=pad2d(params["pred_b"], 1, T_pad),
    )


# ---------------------------------------------------------------------------
# Full forward (encoders / one-hot construction as JAX glue, hot path in Pallas)
# ---------------------------------------------------------------------------
def gin_graph_pre_forward(params, stacked, x, edge_index, edge_attr, batch, num_graphs):
    N = x.shape[0]
    E = edge_index.shape[1]
    D = params["pred_w"].shape[0]
    T = params["pred_w"].shape[1]
    D_pad = stacked["w1"].shape[1]
    N_pad = round_up(N, LANE)
    E_pad = round_up(E, LANE)
    G_pad = round_up(num_graphs, SUBLANE)

    # AtomEncoder / BondEncoder: embedding-table lookups + sum (glue in JAX).
    h0 = sum(tab[x[:, i]] for i, tab in enumerate(params["atom_emb"]))          # [N, D]
    ee = sum(tab[edge_attr[:, i]] for i, tab in enumerate(params["bond_emb"]))  # [E, D]
    h0 = pad2d(h0, N_pad, D_pad)
    ee = pad2d(ee, E_pad, D_pad)

    # Dense one-hot gather / scatter matrices, built directly at MXU dtype
    # (f32 keeps gather/scatter bit-exact); no transpose / downcast temporaries.
    src, dst = edge_index[0], edge_index[1]
    node_ids = jnp.arange(N_pad, dtype=src.dtype)
    gmat = jnp.pad((src[:, None] == node_ids[None, :]).astype(jnp.float32),
                   ((0, E_pad - E), (0, 0)))                                    # [E_pad, N_pad]
    smat = jnp.pad((node_ids[:, None] == dst[None, :]).astype(jnp.float32),
                   ((0, 0), (0, E_pad - E)))                                    # [N_pad, E_pad]

    # BN mask: row 0 = 1/N_real on real nodes (zero on padding) -> MXU stats.
    nmask8 = jnp.zeros((SUBLANE, N_pad), jnp.float32).at[0, :N].set(1.0 / N)

    # global_mean_pool one-hot + reciprocal counts.
    graph_ids = jnp.arange(G_pad, dtype=batch.dtype)
    pool_oh = jnp.pad((graph_ids[:, None] == batch[None, :]).astype(jnp.float32),
                      ((0, 0), (0, N_pad - N)))                                 # [G_pad, N_pad]
    inv_counts = 1.0 / jnp.maximum(jnp.sum(pool_oh, axis=1, keepdims=True), 1.0)

    node_rep_pad, pred_pad = run_gnn_stack(
        h0, ee, gmat, smat, nmask8, pool_oh, inv_counts,
        stacked["pred_w"], stacked["pred_b"],
        stacked["vec"], stacked["w1"], stacked["w2"])

    return pred_pad[:num_graphs, :T], node_rep_pad[:N, :D]


# ---------------------------------------------------------------------------
# Pure-JAX reference (module semantics, unpadded) for correctness check
# ---------------------------------------------------------------------------
def reference_forward(params, x, edge_index, edge_attr, batch, num_graphs):
    h = sum(tab[x[:, i]] for i, tab in enumerate(params["atom_emb"]))
    ee = sum(tab[edge_attr[:, i]] for i, tab in enumerate(params["bond_emb"]))
    src, dst = edge_index[0], edge_index[1]

    def bn(u, g, b):
        mu = u.mean(0, keepdims=True)
        var = ((u - mu) ** 2).mean(0, keepdims=True)
        return (u - mu) / jnp.sqrt(var + BN_EPS) * g + b

    for lp in params["layers"]:
        msg = jax.nn.relu(h[src] + ee)
        aggr = jax.ops.segment_sum(msg, dst, num_segments=h.shape[0])
        z = (1.0 + lp["eps"]) * h + aggr
        u = jax.nn.relu(bn(z @ lp["w1"] + lp["b1"], lp["bn1_g"], lp["bn1_b"]))
        h = jax.nn.relu(bn(u @ lp["w2"] + lp["b2"], lp["bn2_g"], lp["bn2_b"]))

    pooled = jax.ops.segment_sum(h, batch, num_segments=num_graphs)
    cnt = jax.ops.segment_sum(jnp.ones((h.shape[0], 1)), batch, num_segments=num_graphs)
    pooled = pooled / jnp.maximum(cnt, 1.0)
    return pooled @ params["pred_w"] + params["pred_b"], h


# ---------------------------------------------------------------------------
if __name__ == "__main__":
    num_layers, emb_dim, num_tasks = 3, 64, 10
    N, E, num_graphs = 50, 120, 3

    key = jax.random.PRNGKey(0)
    kp, kx, ke, ka = jax.random.split(key, 4)

    params = build_params(kp, num_layers, emb_dim, num_tasks)
    stacked = pad_and_stack_params(params)

    # synthetic graph data
    x = jnp.stack([jax.random.randint(jax.random.fold_in(kx, 0), (N,), 0, 5),
                   jax.random.randint(jax.random.fold_in(kx, 1), (N,), 0, 7)], axis=1)
    edge_index = jnp.stack([jax.random.randint(jax.random.fold_in(ke, 0), (E,), 0, N),
                            jax.random.randint(jax.random.fold_in(ke, 1), (E,), 0, N)], axis=0)
    edge_attr = jnp.stack([jax.random.randint(jax.random.fold_in(ka, 0), (E,), 0, 4),
                           jax.random.randint(jax.random.fold_in(ka, 1), (E,), 0, 3)], axis=1)
    batch = (jnp.arange(N) * num_graphs // N).astype(jnp.int32)   # contiguous graph ids

    fwd = jax.jit(functools.partial(gin_graph_pre_forward, num_graphs=num_graphs))
    pred, node_rep = fwd(params, stacked, x, edge_index, edge_attr, batch)
    pred = jax.block_until_ready(pred)
    node_rep = jax.block_until_ready(node_rep)

    # correctness check against pure-JAX reference
    pred_ref, node_ref = reference_forward(params, x, edge_index, edge_attr,
                                           batch, num_graphs)
    np.testing.assert_allclose(np.asarray(node_rep), np.asarray(node_ref),
                               rtol=2e-4, atol=2e-4)
    np.testing.assert_allclose(np.asarray(pred), np.asarray(pred_ref),
                               rtol=2e-4, atol=2e-4)

    assert pred.shape == (num_graphs, num_tasks)
    assert node_rep.shape == (N, emb_dim)
    print("KERNEL_OK")
</pallas_src>

<mosaic_0001>
module attributes {stable_mosaic.version = 11 : i64} {
  func.func @gnn_stack_kernel(%arg0: i32, %arg1: memref<128x128xf32, #tpu.memory_space<vmem>>, %arg2: memref<128x128xf32, #tpu.memory_space<vmem>>, %arg3: memref<128x128xf32, #tpu.memory_space<vmem>>, %arg4: memref<128x128xf32, #tpu.memory_space<vmem>>, %arg5: memref<8x128xf32, #tpu.memory_space<vmem>>, %arg6: memref<8x128xf32, #tpu.memory_space<vmem>>, %arg7: memref<8x1xf32, #tpu.memory_space<vmem>>, %arg8: memref<128x128xf32, #tpu.memory_space<vmem>>, %arg9: memref<1x128xf32, #tpu.memory_space<vmem>>, %arg10: memref<1x8x128xf32, #tpu.memory_space<vmem>>, %arg11: memref<1x128x128xf32, #tpu.memory_space<vmem>>, %arg12: memref<1x128x128xf32, #tpu.memory_space<vmem>>, %arg13: memref<128x128xf32, #tpu.memory_space<vmem>>, %arg14: memref<8x128xf32, #tpu.memory_space<vmem>>) attributes {dimension_semantics = [#tpu.dimension_semantics<arbitrary>], iteration_bounds = array<i64: 3>, scalar_prefetch = 0 : i64, scratch_operands = 0 : i64, tpu.core_type = #tpu.core_type<tc>, window_params = [{pipeline_mode = #tpu.pipeline_mode<synchronous>, transform_indices = @transform_0, window_bounds = array<i64: 128, 128>}, {pipeline_mode = #tpu.pipeline_mode<synchronous>, transform_indices = @transform_1, window_bounds = array<i64: 128, 128>}, {pipeline_mode = #tpu.pipeline_mode<synchronous>, transform_indices = @transform_2, window_bounds = array<i64: 128, 128>}, {pipeline_mode = #tpu.pipeline_mode<synchronous>, transform_indices = @transform_3, window_bounds = array<i64: 128, 128>}, {pipeline_mode = #tpu.pipeline_mode<synchronous>, transform_indices = @transform_4, window_bounds = array<i64: 8, 128>}, {pipeline_mode = #tpu.pipeline_mode<synchronous>, transform_indices = @transform_5, window_bounds = array<i64: 8, 128>}, {pipeline_mode = #tpu.pipeline_mode<synchronous>, transform_indices = @transform_6, window_bounds = array<i64: 8, 1>}, {pipeline_mode = #tpu.pipeline_mode<synchronous>, transform_indices = @transform_7, window_bounds = array<i64: 128, 128>}, {pipeline_mode = #tpu.pipeline_mode<synchronous>, transform_indices = @transform_8, window_bounds = array<i64: 1, 128>}, {transform_indices = @transform_9, window_bounds = array<i64: 1, 8, 128>}, {transform_indices = @transform_10, window_bounds = array<i64: 1, 128, 128>}, {transform_indices = @transform_11, window_bounds = array<i64: 1, 128, 128>}, {pipeline_mode = #tpu.pipeline_mode<synchronous>, transform_indices = @transform_12, window_bounds = array<i64: 128, 128>}, {pipeline_mode = #tpu.pipeline_mode<synchronous>, transform_indices = @transform_13, window_bounds = array<i64: 8, 128>}]} {
    %c0_i32 = arith.constant 0 : i32
    %0 = arith.cmpi eq, %arg0, %c0_i32 : i32
    %1 = arith.extui %0 : i1 to i32
    %c0_i32_0 = arith.constant 0 : i32
    %2 = arith.cmpi ne, %1, %c0_i32_0 : i32
    scf.if %2 {
      %c0_34 = arith.constant 0 : index
      %c0_35 = arith.constant 0 : index
      %75 = vector.load %arg1[%c0_34, %c0_35] : memref<128x128xf32, #tpu.memory_space<vmem>>, vector<128x128xf32>
      %c0_36 = arith.constant 0 : index
      %c0_37 = arith.constant 0 : index
      %76 = vector.load %arg13[%c0_36, %c0_37] : memref<128x128xf32, #tpu.memory_space<vmem>>, vector<128x128xf32>
      tpu.vector_store %arg13[%c0_36, %c0_37], %75 {strides = array<i32>} : memref<128x128xf32, #tpu.memory_space<vmem>>, vector<128x128xf32>,
    } else {
    }
    %c0 = arith.constant 0 : index
    %c0_1 = arith.constant 0 : index
    %3 = vector.load %arg13[%c0, %c0_1] : memref<128x128xf32, #tpu.memory_space<vmem>>, vector<128x128xf32>
    %c0_2 = arith.constant 0 : index
    %c0_3 = arith.constant 0 : index
    %4 = vector.load %arg5[%c0_2, %c0_3] : memref<8x128xf32, #tpu.memory_space<vmem>>, vector<8x128xf32>
    %c0_4 = arith.constant 0 : index
    %c0_5 = arith.constant 0 : index
    %c0_6 = arith.constant 0 : index
    %5 = vector.load %arg10[%c0_4, %c0_5, %c0_6] : memref<1x8x128xf32, #tpu.memory_space<vmem>>, vector<1x8x128xf32>
    %6 = vector.shape_cast %5 : vector<1x8x128xf32> to vector<8x128xf32>
    %7 = vector.extract_strided_slice %6 {offsets = [0, 0], sizes = [1, 128], strides = [1, 1]} : vector<8x128xf32> to vector<1x128xf32>
    %8 = vector.extract_strided_slice %6 {offsets = [1, 0], sizes = [1, 128], strides = [1, 1]} : vector<8x128xf32> to vector<1x128xf32>
    %9 = vector.extract_strided_slice %6 {offsets = [2, 0], sizes = [1, 128], strides = [1, 1]} : vector<8x128xf32> to vector<1x128xf32>
    %10 = vector.extract_strided_slice %6 {offsets = [3, 0], sizes = [1, 128], strides = [1, 1]} : vector<8x128xf32> to vector<1x128xf32>
    %11 = vector.extract_strided_slice %6 {offsets = [4, 0], sizes = [1, 128], strides = [1, 1]} : vector<8x128xf32> to vector<1x128xf32>
    %12 = vector.extract_strided_slice %6 {offsets = [5, 0], sizes = [1, 128], strides = [1, 1]} : vector<8x128xf32> to vector<1x128xf32>
    %13 = vector.extract_strided_slice %6 {offsets = [6, 0], sizes = [1, 128], strides = [1, 1]} : vector<8x128xf32> to vector<1x128xf32>
    %c0_7 = arith.constant 0 : index
    %c0_8 = arith.constant 0 : index
    %14 = vector.load %arg3[%c0_7, %c0_8] : memref<128x128xf32, #tpu.memory_space<vmem>>, vector<128x128xf32>
    %cst = arith.constant dense<0.000000e+00> : vector<128x128xf32>
    %15 = tpu.matmul %14, %3, %cst {dimension_numbers = #tpu.dot_dimension_numbers<[1], [0], [0], [1], [0, 0, 1, 1], [], []>} : vector<128x128xf32>, vector<128x128xf32>, vector<128x128xf32> -> vector<128x128xf32>
    %c0_9 = arith.constant 0 : index
    %c0_10 = arith.constant 0 : index
    %16 = vector.load %arg2[%c0_9, %c0_10] : memref<128x128xf32, #tpu.memory_space<vmem>>, vector<128x128xf32>
    %17 = arith.addf %15, %16 : vector<128x128xf32>
    %cst_11 = arith.constant 0.000000e+00 : f32
    %18 = vector.broadcast %cst_11 : f32 to vector<128x128xf32>
    %19 = arith.maximumf %17, %18 : vector<128x128xf32>
    %c0_12 = arith.constant 0 : index
    %c0_13 = arith.constant 0 : index
    %20 = vector.load %arg4[%c0_12, %c0_13] : memref<128x128xf32, #tpu.memory_space<vmem>>, vector<128x128xf32>
    %cst_14 = arith.constant dense<0.000000e+00> : vector<128x128xf32>
    %21 = tpu.matmul %20, %19, %cst_14 {dimension_numbers = #tpu.dot_dimension_numbers<[1], [0], [0], [1], [0, 0, 1, 1], [], []>} : vector<128x128xf32>, vector<128x128xf32>, vector<128x128xf32> -> vector<128x128xf32>
    %22 = vector.broadcast %7 : vector<1x128xf32> to vector<128x128xf32>
    %23 = arith.mulf %22, %3 : vector<128x128xf32>
    %24 = arith.addf %23, %21 : vector<128x128xf32>
    %c0_15 = arith.constant 0 : index
    %c0_16 = arith.constant 0 : index
    %c0_17 = arith.constant 0 : index
    %25 = vector.load %arg11[%c0_15, %c0_16, %c0_17] : memref<1x128x128xf32, #tpu.memory_space<vmem>>, vector<1x128x128xf32>
    %26 = vector.shape_cast %25 : vector<1x128x128xf32> to vector<128x128xf32>
    %cst_18 = arith.constant dense<0.000000e+00> : vector<128x128xf32>
    %27 = tpu.matmul %24, %26, %cst_18 {dimension_numbers = #tpu.dot_dimension_numbers<[1], [0], [0], [1], [0, 0, 1, 1], [], []>} : vector<128x128xf32>, vector<128x128xf32>, vector<128x128xf32> -> vector<128x128xf32>
    %28 = vector.broadcast %8 : vector<1x128xf32> to vector<128x128xf32>
    %29 = arith.addf %27, %28 : vector<128x128xf32>
    %cst_19 = arith.constant dense<0.000000e+00> : vector<8x128xf32>
    %30 = tpu.matmul %4, %29, %cst_19 {dimension_numbers = #tpu.dot_dimension_numbers<[1], [0], [0], [1], [0, 0, 1, 1], [], []>} : vector<8x128xf32>, vector<128x128xf32>, vector<8x128xf32> -> vector<8x128xf32>
    %31 = vector.extract_strided_slice %30 {offsets = [0, 0], sizes = [1, 128], strides = [1, 1]} : vector<8x128xf32> to vector<1x128xf32>
    %32 = vector.broadcast %31 : vector<1x128xf32> to vector<128x128xf32>
    %33 = arith.subf %29, %32 : vector<128x128xf32>
    %34 = arith.mulf %33, %33 : vector<128x128xf32>
    %cst_20 = arith.constant dense<0.000000e+00> : vector<8x128xf32>
    %35 = tpu.matmul %4, %34, %cst_20 {dimension_numbers = #tpu.dot_dimension_numbers<[1], [0], [0], [1], [0, 0, 1, 1], [], []>} : vector<8x128xf32>, vector<128x128xf32>, vector<8x128xf32> -> vector<8x128xf32>
    %36 = vector.extract_strided_slice %35 {offsets = [0, 0], sizes = [1, 128], strides = [1, 1]} : vector<8x128xf32> to vector<1x128xf32>
    %cst_21 = arith.constant 9.99999974E-6 : f32
    %37 = vector.broadcast %cst_21 : f32 to vector<1x128xf32>
    %38 = arith.addf %36, %37 : vector<1x128xf32>
    %39 = math.rsqrt %38 : vector<1x128xf32>
    %40 = vector.broadcast %39 : vector<1x128xf32> to vector<128x128xf32>
    %41 = arith.mulf %33, %40 : vector<128x128xf32>
    %42 = vector.broadcast %9 : vector<1x128xf32> to vector<128x128xf32>
    %43 = arith.mulf %41, %42 : vector<128x128xf32>
    %44 = vector.broadcast %10 : vector<1x128xf32> to vector<128x128xf32>
    %45 = arith.addf %43, %44 : vector<128x128xf32>
    %cst_22 = arith.constant 0.000000e+00 : f32
    %46 = vector.broadcast %cst_22 : f32 to vector<128x128xf32>
    %47 = arith.maximumf %45, %46 : vector<128x128xf32>
    %c0_23 = arith.constant 0 : index
    %c0_24 = arith.constant 0 : index
    %c0_25 = arith.constant 0 : index
    %48 = vector.load %arg12[%c0_23, %c0_24, %c0_25] : memref<1x128x128xf32, #tpu.memory_space<vmem>>, vector<1x128x128xf32>
    %49 = vector.shape_cast %48 : vector<1x128x128xf32> to vector<128x128xf32>
    %cst_26 = arith.constant dense<0.000000e+00> : vector<128x128xf32>
    %50 = tpu.matmul %47, %49, %cst_26 {dimension_numbers = #tpu.dot_dimension_numbers<[1], [0], [0], [1], [0, 0, 1, 1], [], []>} : vector<128x128xf32>, vector<128x128xf32>, vector<128x128xf32> -> vector<128x128xf32>
    %51 = vector.broadcast %11 : vector<1x128xf32> to vector<128x128xf32>
    %52 = arith.addf %50, %51 : vector<128x128xf32>
    %cst_27 = arith.constant dense<0.000000e+00> : vector<8x128xf32>
    %53 = tpu.matmul %4, %52, %cst_27 {dimension_numbers = #tpu.dot_dimension_numbers<[1], [0], [0], [1], [0, 0, 1, 1], [], []>} : vector<8x128xf32>, vector<128x128xf32>, vector<8x128xf32> -> vector<8x128xf32>
    %54 = vector.extract_strided_slice %53 {offsets = [0, 0], sizes = [1, 128], strides = [1, 1]} : vector<8x128xf32> to vector<1x128xf32>
    %55 = vector.broadcast %54 : vector<1x128xf32> to vector<128x128xf32>
    %56 = arith.subf %52, %55 : vector<128x128xf32>
    %57 = arith.mulf %56, %56 : vector<128x128xf32>
    %cst_28 = arith.constant dense<0.000000e+00> : vector<8x128xf32>
    %58 = tpu.matmul %4, %57, %cst_28 {dimension_numbers = #tpu.dot_dimension_numbers<[1], [0], [0], [1], [0, 0, 1, 1], [], []>} : vector<8x128xf32>, vector<128x128xf32>, vector<8x128xf32> -> vector<8x128xf32>
    %59 = vector.extract_strided_slice %58 {offsets = [0, 0], sizes = [1, 128], strides = [1, 1]} : vector<8x128xf32> to vector<1x128xf32>
    %cst_29 = arith.constant 9.99999974E-6 : f32
    %60 = vector.broadcast %cst_29 : f32 to vector<1x128xf32>
    %61 = arith.addf %59, %60 : vector<1x128xf32>
    %62 = math.rsqrt %61 : vector<1x128xf32>
    %63 = vector.broadcast %62 : vector<1x128xf32> to vector<128x128xf32>
    %64 = arith.mulf %56, %63 : vector<128x128xf32>
    %65 = vector.broadcast %12 : vector<1x128xf32> to vector<128x128xf32>
    %66 = arith.mulf %64, %65 : vector<128x128xf32>
    %67 = vector.broadcast %13 : vector<1x128xf32> to vector<128x128xf32>
    %68 = arith.addf %66, %67 : vector<128x128xf32>
    %cst_30 = arith.constant 0.000000e+00 : f32
    %69 = vector.broadcast %cst_30 : f32 to vector<128x128xf32>
    %70 = arith.maximumf %68, %69 : vector<128x128xf32>
    %c0_31 = arith.constant 0 : index
    %c0_32 = arith.constant 0 : index
    %71 = vector.load %arg13[%c0_31, %c0_32] : memref<128x128xf32, #tpu.memory_space<vmem>>, vector<128x128xf32>
    tpu.vector_store %arg13[%c0_31, %c0_32], %70 {strides = array<i32>} : memref<128x128xf32, #tpu.memory_space<vmem>>, vector<128x128xf32>,
    %c2_i32 = arith.constant 2 : i32
    %72 = arith.cmpi eq, %arg0, %c2_i32 : i32
    %73 = arith.extui %72 : i1 to i32
    %c0_i32_33 = arith.constant 0 : i32
    %74 = arith.cmpi ne, %73, %c0_i32_33 : i32
    scf.if %74 {
      %c0_34 = arith.constant 0 : index
      %c0_35 = arith.constant 0 : index
      %75 = vector.load %arg6[%c0_34, %c0_35] : memref<8x128xf32, #tpu.memory_space<vmem>>, vector<8x128xf32>
      %cst_36 = arith.constant dense<0.000000e+00> : vector<8x128xf32>
      %76 = tpu.matmul %75, %70, %cst_36 {dimension_numbers = #tpu.dot_dimension_numbers<[1], [0], [0], [1], [0, 0, 1, 1], [], []>} : vector<8x128xf32>, vector<128x128xf32>, vector<8x128xf32> -> vector<8x128xf32>
      %c0_37 = arith.constant 0 : index
      %c0_38 = arith.constant 0 : index
      %77 = vector.load %arg7[%c0_37, %c0_38] : memref<8x1xf32, #tpu.memory_space<vmem>>, vector<8x1xf32>
      %78 = vector.broadcast %77 : vector<8x1xf32> to vector<8x128xf32>
      %79 = arith.mulf %76, %78 : vector<8x128xf32>
      %c0_39 = arith.constant 0 : index
      %c0_40 = arith.constant 0 : index
      %80 = vector.load %arg8[%c0_39, %c0_40] : memref<128x128xf32, #tpu.memory_space<vmem>>, vector<128x128xf32>
      %cst_41 = arith.constant dense<0.000000e+00> : vector<8x128xf32>
      %81 = tpu.matmul %79, %80, %cst_41 {dimension_numbers = #tpu.dot_dimension_numbers<[1], [0], [0], [1], [0, 0, 1, 1], [], []>} : vector<8x128xf32>, vector<128x128xf32>, vector<8x128xf32> -> vector<8x128xf32>
      %c0_42 = arith.constant 0 : index
      %c0_43 = arith.constant 0 : index
      %82 = vector.load %arg9[%c0_42, %c0_43] : memref<1x128xf32, #tpu.memory_space<vmem>>, vector<1x128xf32>
      %83 = vector.broadcast %82 : vector<1x128xf32> to vector<8x128xf32>
      %84 = arith.addf %81, %83 : vector<8x128xf32>
      %c0_44 = arith.constant 0 : index
      %c0_45 = arith.constant 0 : index
      %85 = vector.load %arg14[%c0_44, %c0_45] : memref<8x128xf32, #tpu.memory_space<vmem>>, vector<8x128xf32>
      tpu.vector_store %arg14[%c0_44, %c0_45], %84 {strides = array<i32>} : memref<8x128xf32, #tpu.memory_space<vmem>>, vector<8x128xf32>,
    } else {
    }
    return
  }
  func.func @transform_0(%arg0: i32) -> (i32, i32) {
    %c0_i32 = arith.constant 0 : i32
    %c0_i32_0 = arith.constant 0 : i32
    %c0_i32_1 = arith.constant 0 : i32
    return %c0_i32, %c0_i32_0 : i32, i32
  }
  func.func @transform_1(%arg0: i32) -> (i32, i32) {
    %c0_i32 = arith.constant 0 : i32
    %c0_i32_0 = arith.constant 0 : i32
    %c0_i32_1 = arith.constant 0 : i32
    return %c0_i32, %c0_i32_0 : i32, i32
  }
  func.func @transform_2(%arg0: i32) -> (i32, i32) {
    %c0_i32 = arith.constant 0 : i32
    %c0_i32_0 = arith.constant 0 : i32
    %c0_i32_1 = arith.constant 0 : i32
    return %c0_i32, %c0_i32_0 : i32, i32
  }
  func.func @transform_3(%arg0: i32) -> (i32, i32) {
    %c0_i32 = arith.constant 0 : i32
    %c0_i32_0 = arith.constant 0 : i32
    %c0_i32_1 = arith.constant 0 : i32
    return %c0_i32, %c0_i32_0 : i32, i32
  }
  func.func @transform_4(%arg0: i32) -> (i32, i32) {
    %c0_i32 = arith.constant 0 : i32
    %c0_i32_0 = arith.constant 0 : i32
    %c0_i32_1 = arith.constant 0 : i32
    return %c0_i32, %c0_i32_0 : i32, i32
  }
  func.func @transform_5(%arg0: i32) -> (i32, i32) {
    %c0_i32 = arith.constant 0 : i32
    %c0_i32_0 = arith.constant 0 : i32
    %c0_i32_1 = arith.constant 0 : i32
    return %c0_i32, %c0_i32_0 : i32, i32
  }
  func.func @transform_6(%arg0: i32) -> (i32, i32) {
    %c0_i32 = arith.constant 0 : i32
    %c0_i32_0 = arith.constant 0 : i32
    %c0_i32_1 = arith.constant 0 : i32
    return %c0_i32, %c0_i32_0 : i32, i32
  }
  func.func @transform_7(%arg0: i32) -> (i32, i32) {
    %c0_i32 = arith.constant 0 : i32
    %c0_i32_0 = arith.constant 0 : i32
    %c0_i32_1 = arith.constant 0 : i32
    return %c0_i32, %c0_i32_0 : i32, i32
  }
  func.func @transform_8(%arg0: i32) -> (i32, i32) {
    %c0_i32 = arith.constant 0 : i32
    %c0_i32_0 = arith.constant 0 : i32
    %c0_i32_1 = arith.constant 0 : i32
    return %c0_i32, %c0_i32_0 : i32, i32
  }
  func.func @transform_9(%arg0: i32) -> (i32, i32, i32) {
    %c0_i32 = arith.constant 0 : i32
    %c0_i32_0 = arith.constant 0 : i32
    %c0_i32_1 = arith.constant 0 : i32
    return %arg0, %c0_i32, %c0_i32_0 : i32, i32, i32
  }
  func.func @transform_10(%arg0: i32) -> (i32, i32, i32) {
    %c0_i32 = arith.constant 0 : i32
    %c0_i32_0 = arith.constant 0 : i32
    %c0_i32_1 = arith.constant 0 : i32
    return %arg0, %c0_i32, %c0_i32_0 : i32, i32, i32
  }
  func.func @transform_11(%arg0: i32) -> (i32, i32, i32) {
    %c0_i32 = arith.constant 0 : i32
    %c0_i32_0 = arith.constant 0 : i32
    %c0_i32_1 = arith.constant 0 : i32
    return %arg0, %c0_i32, %c0_i32_0 : i32, i32, i32
  }
  func.func @transform_12(%arg0: i32) -> (i32, i32) {
    %c0_i32 = arith.constant 0 : i32
    %c0_i32_0 = arith.constant 0 : i32
    %c0_i32_1 = arith.constant 0 : i32
    return %c0_i32, %c0_i32_0 : i32, i32
  }
  func.func @transform_13(%arg0: i32) -> (i32, i32) {
    %c0_i32 = arith.constant 0 : i32
    %c0_i32_0 = arith.constant 0 : i32
    %c0_i32_1 = arith.constant 0 : i32
    return %c0_i32, %c0_i32_0 : i32, i32
  }
}

</mosaic_0001>

<bundles_post_ra>
// kernel: gin_graph_pre_forward.1
= control target key start
LH: loop header
LB: loop body
LE: loop exit
PB: predicated region body
PF: predicated region fallthrough
CT: control target
= control target key end

     0   :  { %s3050_s25 = smov 0   ;;  %s3940_s0 = inlined_call_operand.vmem [shape: f32[128,128], index: 0, kind: input, shape index: {}]   ;;  %s3941_s1 = inlined_call_operand.vmem [shape: f32[128,128], index: 1, kind: input, shape index: {}]   ;;  %s3942_s2 = inlined_call_operand.vmem [shape: f32[128,128], index: 2, kind: input, shape index: {}]   ;;  %s3943_s3 = inlined_call_operand.vmem [shape: f32[128,128], index: 3, kind: input, shape index: {}]   ;;  %s3944_s4 = inlined_call_operand.vmem [shape: f32[8,128], index: 4, kind: input, shape index: {}]   ;;  %s3945_s5 = inlined_call_operand.vmem [shape: f32[8,128], index: 5, kind: input, shape index: {}]   ;;  %s3946_s6 = inlined_call_operand.vmem [shape: f32[8,1], index: 6, kind: input, shape index: {}]   ;;  %s3947_s7 = inlined_call_operand.vmem [shape: f32[128,128], index: 7, kind: input, shape index: {}]   ;;  %s3948_s8 = inlined_call_operand.vmem [shape: f32[1,128], index: 8, kind: input, shape index: {}]   ;;  %s3949_s9 = inlined_call_operand.vmem [shape: f32[3,8,128], index: 9, kind: input, shape index: {}]   ;;  %s3950_s10 = inlined_call_operand.vmem [shape: f32[3,128,128], index: 10, kind: input, shape index: {}]   ;;  %s3951_s11 = inlined_call_operand.vmem [shape: f32[3,128,128], index: 11, kind: input, shape index: {}]   ;;  %s3952_s12 = inlined_call_operand.vmem [shape: f32[128,128], index: 12, kind: output, shape index: {0}]   ;;  %s3953_s13 = inlined_call_operand.vmem [shape: f32[8,128], index: 13, kind: output, shape index: {1}]  }
   0x1 LB: > { %s3056_s26 = sadd.s32 4294967295, %s2971_s25   ;;  %p1996_p0 = scmp.ge.s32.totalorder %s2971_s25, 1  ;;  %s2971_s25 = sphi %s3050_s25, %s24_s25  }
   0x2   : > { %p399_p1 = scmp.lt.s32.totalorder %s2971_s25, 4 }
   0x4   : > { %p400_p2 = pnand %p1996_p0, %p399_p1 }
   0x5   : > { %p447_p3 = scmp.lt.s32.totalorder (!%p400_p2), %s3056_s26, 2  ;;  %p2002_p4 = scmp.ne.s32.totalorder (!%p400_p2), %s3056_s26, 0 }
   0x6   : > { %403 = sbr.rel (%p400_p2) target bundleno = 2465 (0x9a1), region = 68 }
   0xd   : > { %s448_s27 = scalar_select %p447_p3, %s3056_s26, 2 }
   0xe   : > { %464 = sbr.rel (%p2002_p4) target bundleno = 23 (0x17), region = 72  ;;  %v465_v0 = vld [vmem:[%s3940_s0] sm:$0xff] (!%p2002_p4)  ;;  %v466_v1 = vld [vmem:[%s3940_s0 + $0x8] sm:$0xff] (!%p2002_p4)  ;;  %v467_v2 = vld [vmem:[%s3940_s0 + $0x10] sm:$0xff] (!%p2002_p4) }
   0xf   : > { %s1997_s28 = sshll.u32 %s448_s27, 3  ;;  %s2007_s29 = sshll.u32 %s448_s27, 7  ;;  %481 = vst [vmem:[%s3952_s12] sm:$0xff] (!%p2002_p4), %v465_v0  ;;  %482 = vst [vmem:[%s3952_s12 + $0x8] sm:$0xff] (!%p2002_p4), %v466_v1  ;;  %v468_v3 = vld [vmem:[%s3940_s0 + $0x18] sm:$0xff] (!%p2002_p4)  ;;  %v469_v4 = vld [vmem:[%s3940_s0 + $0x20] sm:$0xff] (!%p2002_p4) }
  0x10   : > { %s3065_s15 = scalar_lea.vmem %s3949_s9, %s1997_s28  ;;  %s3070_s18 = scalar_lea.vmem %s3950_s10, %s2007_s29  ;;  %483 = vst [vmem:[%s3952_s12 + $0x10] sm:$0xff] (!%p2002_p4), %v467_v2  ;;  %v470_v5 = vld [vmem:[%s3940_s0 + $0x28] sm:$0xff] (!%p2002_p4)  ;;  %484 = vst [vmem:[%s3952_s12 + $0x18] sm:$0xff] (!%p2002_p4), %v468_v3  ;;  %v471_v6 = vld [vmem:[%s3940_s0 + $0x30] sm:$0xff] (!%p2002_p4) }
  0x11   : > { %s3075_s21 = scalar_lea.vmem %s3951_s11, %s2007_s29  ;;  %485 = vst [vmem:[%s3952_s12 + $0x20] sm:$0xff] (!%p2002_p4), %v469_v4  ;;  %486 = vst [vmem:[%s3952_s12 + $0x28] sm:$0xff] (!%p2002_p4), %v470_v5  ;;  %v472_v7 = vld [vmem:[%s3940_s0 + $0x38] sm:$0xff] (!%p2002_p4)  ;;  %v473_v8 = vld [vmem:[%s3940_s0 + $0x40] sm:$0xff] (!%p2002_p4) }
  0x12   : > { %487 = vst [vmem:[%s3952_s12 + $0x30] sm:$0xff] (!%p2002_p4), %v471_v6  ;;  %488 = vst [vmem:[%s3952_s12 + $0x38] sm:$0xff] (!%p2002_p4), %v472_v7  ;;  %v474_v9 = vld [vmem:[%s3940_s0 + $0x48] sm:$0xff] (!%p2002_p4)  ;;  %v475_v10 = vld [vmem:[%s3940_s0 + $0x50] sm:$0xff] (!%p2002_p4) }
  0x13   : > { %489 = vst [vmem:[%s3952_s12 + $0x40] sm:$0xff] (!%p2002_p4), %v473_v8  ;;  %v476_v11 = vld [vmem:[%s3940_s0 + $0x58] sm:$0xff] (!%p2002_p4)  ;;  %490 = vst [vmem:[%s3952_s12 + $0x48] sm:$0xff] (!%p2002_p4), %v474_v9  ;;  %v477_v12 = vld [vmem:[%s3940_s0 + $0x60] sm:$0xff] (!%p2002_p4) }
  0x14   : > { %491 = vst [vmem:[%s3952_s12 + $0x50] sm:$0xff] (!%p2002_p4), %v475_v10  ;;  %492 = vst [vmem:[%s3952_s12 + $0x58] sm:$0xff] (!%p2002_p4), %v476_v11  ;;  %v478_v13 = vld [vmem:[%s3940_s0 + $0x68] sm:$0xff] (!%p2002_p4)  ;;  %v479_v14 = vld [vmem:[%s3940_s0 + $0x70] sm:$0xff] (!%p2002_p4) }
  0x15   : > { %493 = vst [vmem:[%s3952_s12 + $0x60] sm:$0xff] %v477_v12  ;;  %494 = vst [vmem:[%s3952_s12 + $0x68] sm:$0xff] %v478_v13  ;;  %v480_v15 = vld [vmem:[%s3940_s0 + $0x78] sm:$0xff] }
  0x16   : > { %495 = vst [vmem:[%s3952_s12 + $0x70] sm:$0xff] %v479_v14  ;;  %496 = vst [vmem:[%s3952_s12 + $0x78] sm:$0xff] %v480_v15 }
  0x17 PF: > { %v515_v25 = vld [vmem:[%s3942_s2] sm:$0xff]  ;;  %v516_v41 = vld [vmem:[%s3942_s2 + $0x8] sm:$0xff]  ;;  %v517_v42 = vld [vmem:[%s3942_s2 + $0x10] sm:$0xff]  ;;  %vm2974_vm0 = vmmov 0   ;;  %p2003_p5 = scmp.ne.s32.totalorder %s3056_s26, 2 }
  0x18   : > { %v3177_v16 = vld [vmem:[%s3952_s12] sm:$0xff]  ;;  %v3182_v17 = vld [vmem:[%s3952_s12 + $0x8] sm:$0xff]  ;;  %2271 = vmatprep.mubr.f32.mxu0 %v515_v25  ;;  %v518_v43 = vld [vmem:[%s3942_s2 + $0x18] sm:$0xff]  ;;  %vm2977_vm1 = vmmov (!%p2003_p5), 0  }
  0x19   : > { %v3187_v18 = vld [vmem:[%s3952_s12 + $0x10] sm:$0xff]  ;;  %v2673_v19 = vpack.c.bf16 %v3182_v17, %v3177_v16  ;;  %v3194_v20 = vld [vmem:[%s3952_s12 + $0x18] sm:$0xff]  ;;  %v519_v44 = vld [vmem:[%s3942_s2 + $0x20] sm:$0xff] }
  0x1a   : > { %v2677_v21 = vpack.c.bf16 %v3194_v20, %v3187_v18  ;;  %v3201_v22 = vld [vmem:[%s3952_s12 + $0x20] sm:$0xff]  ;;  %v3206_v23 = vld [vmem:[%s3952_s12 + $0x28] sm:$0xff]  ;;  %v521_v46 = vld [vmem:[%s3942_s2 + $0x30] sm:$0xff] }
  0x1b   : > { %2674 = vmatprep.subr.bf16.mxu0 %v2673_v19  ;;  %v2681_v24 = vpack.c.bf16 %v3206_v23, %v3201_v22  ;;  %v3216_v26 = vld [vmem:[%s3952_s12 + $0x30] sm:$0xff]  ;;  %v3221_v27 = vld [vmem:[%s3952_s12 + $0x38] sm:$0xff]  ;;  %v520_v45 = vld [vmem:[%s3942_s2 + $0x28] sm:$0xff] }
  0x1c   : > { %2676 = vmatpush3.bf16.msra.mxu0 %v2673_v19  ;;  %v2685_v28 = vpack.c.bf16 %v3221_v27, %v3216_v26  ;;  %v3228_v29 = vld [vmem:[%s3952_s12 + $0x40] sm:$0xff]  ;;  %v3233_v30 = vld [vmem:[%s3952_s12 + $0x48] sm:$0xff]  ;;  %v522_v47 = vld [vmem:[%s3942_s2 + $0x38] sm:$0xff] }
  0x1d   : > { %2678 = vmatprep.subr.bf16.mxu0 %v2677_v21  ;;  %v2689_v31 = vpack.c.bf16 %v3233_v30, %v3228_v29  ;;  %v3240_v32 = vld [vmem:[%s3952_s12 + $0x50] sm:$0xff]  ;;  %v3245_v33 = vld [vmem:[%s3952_s12 + $0x58] sm:$0xff]  ;;  %v523_v48 = vld [vmem:[%s3942_s2 + $0x40] sm:$0xff] }
  0x1e   : > { %v2693_v34 = vpack.c.bf16 %v3245_v33, %v3240_v32  ;;  %v3252_v35 = vld [vmem:[%s3952_s12 + $0x60] sm:$0xff]  ;;  %v3257_v36 = vld [vmem:[%s3952_s12 + $0x68] sm:$0xff]  ;;  %v3264_v38 = vld [vmem:[%s3952_s12 + $0x70] sm:$0xff] }
  0x1f   : > { %v2697_v37 = vpack.c.bf16 %v3257_v36, %v3252_v35  ;;  %v3269_v39 = vld [vmem:[%s3952_s12 + $0x78] sm:$0xff]  ;;  %v524_v49 = vld [vmem:[%s3942_s2 + $0x48] sm:$0xff]  ;;  %v525_v50 = vld [vmem:[%s3942_s2 + $0x50] sm:$0xff] }
  0x20   : > { %2680 = vmatpush3.bf16.msra.mxu0 %v2677_v21  ;;  %v2701_v40 = vpack.c.bf16 %v3269_v39, %v3264_v38  ;;  %v526_v51 = vld [vmem:[%s3942_s2 + $0x58] sm:$0xff]  ;;  %v527_v52 = vld [vmem:[%s3942_s2 + $0x60] sm:$0xff]  ;;  %v528_v53 = vld [vmem:[%s3942_s2 + $0x68] sm:$0xff] }
  0x21   : > { %2682 = vmatprep.subr.bf16.mxu0 %v2681_v24  ;;  %v529_v54 = vld [vmem:[%s3942_s2 + $0x70] sm:$0xff]  ;;  %v530_v55 = vld [vmem:[%s3942_s2 + $0x78] sm:$0xff]  ;;  %v708_v56 = vld [vmem:[%s3943_s3] sm:$0xff] }
  0x22   : > { %2327 = vmatprep.mubr.f32.mxu1 %v708_v56  ;;  %v905_v57 = vld [vmem:[%s3070_s18] sm:$0xff]  ;;  %v906_v58 = vld [vmem:[%s3070_s18 + $0x8] sm:$0xff]  ;;  %v907_v59 = vld [vmem:[%s3070_s18 + $0x10] sm:$0xff] }
  0x23   : > { %v2737_v60 = vpack.c.bf16 %v906_v58, %v905_v57  ;;  %v908_v61 = vld [vmem:[%s3070_s18 + $0x18] sm:$0xff]  ;;  %v909_v63 = vld [vmem:[%s3070_s18 + $0x20] sm:$0xff]  ;;  %v910_v0 = vld [vmem:[%s3070_s18 + $0x28] sm:$0xff] }
  0x24   : > { %2684 = vmatpush3.bf16.msra.mxu0 %v2681_v24  ;;  %v2741_v62 = vpack.c.bf16 %v908_v61, %v907_v59  ;;  %v2745_v1 = vpack.c.bf16 %v910_v0, %v909_v63  ;;  %v911_v2 = vld [vmem:[%s3070_s18 + $0x30] sm:$0xff]  ;;  %v912_v3 = vld [vmem:[%s3070_s18 + $0x38] sm:$0xff]  ;;  %v913_v5 = vld [vmem:[%s3070_s18 + $0x40] sm:$0xff] }
  0x25   : > { %2686 = vmatprep.subr.bf16.mxu0 %v2685_v28  ;;  %v2749_v4 = vpack.c.bf16 %v912_v3, %v911_v2  ;;  %v914_v6 = vld [vmem:[%s3070_s18 + $0x48] sm:$0xff]  ;;  %v915_v8 = vld [vmem:[%s3070_s18 + $0x50] sm:$0xff]  ;;  %v916_v9 = vld [vmem:[%s3070_s18 + $0x58] sm:$0xff] }
  0x26   : > { %v2753_v7 = vpack.c.bf16 %v914_v6, %v913_v5  ;;  %v2757_v10 = vpack.c.bf16 %v916_v9, %v915_v8  ;;  %v917_v11 = vld [vmem:[%s3070_s18 + $0x60] sm:$0xff]  ;;  %v918_v12 = vld [vmem:[%s3070_s18 + $0x68] sm:$0xff]  ;;  %v537_v56 = vld [vmem:[%s3941_s1 + $0x30] sm:$0xff] }
  0x27   : > { %v2761_v13 = vpack.c.bf16 %v918_v12, %v917_v11  ;;  %v532_v14 = vld [vmem:[%s3941_s1 + $0x8] sm:$0xff]  ;;  %v531_v15 = vld [vmem:[%s3941_s1] sm:$0xff]  ;;  %v542_v8 = vld [vmem:[%s3941_s1 + $0x58] sm:$0xff] }
  0x28   : > { %2688 = vmatpush3.bf16.msra.mxu0 %v2685_v28  ;;  %v534_v28 = vld [vmem:[%s3941_s1 + $0x18] sm:$0xff]  ;;  %v540_v63 = vld [vmem:[%s3941_s1 + $0x48] sm:$0xff] }
  0x29   : > { %2690 = vmatprep.subr.bf16.mxu0 %v2689_v31 }
  0x2c   : > { %2692 = vmatpush3.bf16.msra.mxu0 %v2689_v31 }
  0x2d   : > { %2694 = vmatprep.subr.bf16.mxu0 %v2693_v34 }
  0x30   : > { %2696 = vmatpush3.bf16.msra.mxu0 %v2693_v34  ;;  %v533_v34 = vld [vmem:[%s3941_s1 + $0x10] sm:$0xff] }
  0x31   : > { %2698 = vmatprep.subr.bf16.mxu0 %v2697_v37 }
  0x34   : > { %2700 = vmatpush3.bf16.msra.mxu0 %v2697_v37 }
  0x35   : > { %2702 = vmatprep.subr.bf16.mxu0 %v2701_v40 }
  0x38   : > { %2704 = vmatpush3.bf16.msra.mxu0 %v2701_v40 }
  0x39   : > { %2738 = vmatprep.subr.bf16.mxu0 %v2737_v60 }
  0x3b   : > { %2272 = vmatmul.mubr.f32.vlgmr.msra.gmra.mrb[0].mxu0 %v516_v41 }
  0x3c   : > { %2274 = vmatprep.mubr.f32.mxu0 %v517_v42  ;;  %2740 = vmatpush3.bf16.msra.mxu0 %v2737_v60 }
  0x3d   : > { %2742 = vmatprep.subr.bf16.mxu0 %v2741_v62 }
  0x3f   : > { %2275 = vmatmul.mubr.f32.gmra.mrb[2].mxu0 %v518_v43 }
  0x40   : > { %2277 = vmatprep.mubr.f32.mxu0 %v519_v44  ;;  %2744 = vmatpush3.bf16.msra.mxu0 %v2741_v62  ;;  %v536_v44 = vld [vmem:[%s3941_s1 + $0x28] sm:$0xff] }
  0x41   : > { %2746 = vmatprep.subr.bf16.mxu0 %v2745_v1 }
  0x43   : > { %2278 = vmatmul.mubr.f32.gmra.mrb[4].mxu0 %v520_v45 }
  0x44   : > { %2280 = vmatprep.mubr.f32.mxu0 %v521_v46  ;;  %2748 = vmatpush3.bf16.msra.mxu0 %v2745_v1  ;;  %v539_v1 = vld [vmem:[%s3941_s1 + $0x40] sm:$0xff] }
  0x45   : > { %2750 = vmatprep.subr.bf16.mxu0 %v2749_v4 }
  0x47   : > { %2281 = vmatmul.mubr.f32.gmra.mrb[6].mxu0 %v522_v47  ;;  %v535_v47 = vld [vmem:[%s3941_s1 + $0x20] sm:$0xff] }
  0x48   : > { %2283 = vmatprep.mubr.f32.mxu0 %v523_v48  ;;  %2752 = vmatpush3.bf16.msra.mxu0 %v2749_v4 }
  0x49   : > { %2754 = vmatprep.subr.bf16.mxu0 %v2753_v7 }
  0x4b   : > { %2284 = vmatmul.mubr.f32.gmra.mrb[8].mxu0 %v524_v49 }
  0x4c   : > { %2286 = vmatprep.mubr.f32.mxu0 %v525_v50  ;;  %2756 = vmatpush3.bf16.msra.mxu0 %v2753_v7 }
  0x4d   : > { %2758 = vmatprep.subr.bf16.mxu0 %v2757_v10 }
  0x4f   : > { %2287 = vmatmul.mubr.f32.gmra.mrb[10].mxu0 %v526_v51 }
  0x50   : > { %2289 = vmatprep.mubr.f32.mxu0 %v527_v52  ;;  %2760 = vmatpush3.bf16.msra.mxu0 %v2757_v10  ;;  %v541_v10 = vld [vmem:[%s3941_s1 + $0x50] sm:$0xff] }
  0x51   : > { %2762 = vmatprep.subr.bf16.mxu0 %v2761_v13 }
  0x53   : > { %2290 = vmatmul.mubr.f32.gmra.mrb[12].mxu0 %v528_v53 }
  0x54   : > { %2292 = vmatprep.mubr.f32.mxu0 %v529_v54  ;;  %2764 = vmatpush3.bf16.msra.mxu0 %v2761_v13  ;;  %v538_v54 = vld [vmem:[%s3941_s1 + $0x38] sm:$0xff] }
  0x57   : > { %2293 = vmatmul.mubr.f32.gmra.mrb[14].mxu0 %v530_v55 }
 0x10e   : > { %v2273_v19 = vpop.f32.mrb[0].mxu0 }
 0x10f   : > { %v619_v21 = vadd.f32 %v2273_v19, %v532_v14  ;;  %v613_v24 = vpop.f32.mrb[1].mxu0 }
 0x110   : > { %v614_v25 = vadd.f32 %v613_v24, %v531_v15 }
 0x111   : > { %v693_v31 = vmax.f32 %v619_v21, 0.0  ;;  %v544_v21 = vld [vmem:[%s3941_s1 + $0x68] sm:$0xff] }
 0x112   : > { %v692_v37 = vmax.f32 %v614_v25, 0.0  ;;  %v2276_v40 = vpop.f32.mrb[2].mxu0  ;;  %v543_v25 = vld [vmem:[%s3941_s1 + $0x60] sm:$0xff] }
 0x113   : > { %v629_v41 = vadd.f32 %v2276_v40, %v534_v28  ;;  %v623_v42 = vpop.f32.mrb[3].mxu0 }
 0x114   : > { %v624_v43 = vadd.f32 %v623_v42, %v533_v34  ;;  %v2705_v45 = vpack.c.bf16 %v693_v31, %v692_v37  ;;  %v546_v42 = vld [vmem:[%s3941_s1 + $0x78] sm:$0xff] }
 0x115   : > { %v695_v46 = vmax.f32 %v629_v41, 0.0 }
 0x116   : > { %v694_v48 = vmax.f32 %v624_v43, 0.0  ;;  %v2279_v49 = vpop.f32.mrb[4].mxu0  ;;  %2706 = vmatprep.subr.bf16.mxu1 %v2705_v45 }
 0x117   : > { %v639_v50 = vadd.f32 %v2279_v49, %v536_v44  ;;  %v633_v51 = vpop.f32.mrb[5].mxu0  ;;  %2708 = vmatpush3.bf16.msra.mxu1 %v2705_v45  ;;  %v545_v44 = vld [vmem:[%s3941_s1 + $0x70] sm:$0xff] }
 0x118   : > { %v2709_v52 = vpack.c.bf16 %v695_v46, %v694_v48  ;;  %v634_v53 = vadd.f32 %v633_v51, %v535_v47 }
 0x119   : > { %v697_v55 = vmax.f32 %v639_v50, 0.0 }
 0x11a   : > { %v696_v57 = vmax.f32 %v634_v53, 0.0  ;;  %v2282_v58 = vpop.f32.mrb[6].mxu0  ;;  %2710 = vmatprep.subr.bf16.mxu1 %v2709_v52 }
 0x11b   : > { %v649_v59 = vadd.f32 %v2282_v58, %v538_v54  ;;  %v643_v60 = vpop.f32.mrb[7].mxu0  ;;  %2712 = vmatpush3.bf16.msra.mxu1 %v2709_v52  ;;  %v709_v54 = vld [vmem:[%s3943_s3 + $0x8] sm:$0xff] }
 0x11c   : > { %v2713_v61 = vpack.c.bf16 %v697_v55, %v696_v57  ;;  %v644_v62 = vadd.f32 %v643_v60, %v537_v56  ;;  %v710_v55 = vld [vmem:[%s3943_s3 + $0x10] sm:$0xff]  ;;  %v711_v56 = vld [vmem:[%s3943_s3 + $0x18] sm:$0xff]  ;;  %v712_v57 = vld [vmem:[%s3943_s3 + $0x20] sm:$0xff] }
 0x11d   : > { %v699_v0 = vmax.f32 %v649_v59, 0.0  ;;  %v713_v58 = vld [vmem:[%s3943_s3 + $0x28] sm:$0xff]  ;;  %v714_v59 = vld [vmem:[%s3943_s3 + $0x30] sm:$0xff]  ;;  %v715_v60 = vld [vmem:[%s3943_s3 + $0x38] sm:$0xff] }
 0x11e   : > { %v698_v2 = vmax.f32 %v644_v62, 0.0  ;;  %v2285_v3 = vpop.f32.mrb[8].mxu0  ;;  %2714 = vmatprep.subr.bf16.mxu1 %v2713_v61  ;;  %v717_v62 = vld [vmem:[%s3943_s3 + $0x48] sm:$0xff] }
 0x11f   : > { %v659_v4 = vadd.f32 %v2285_v3, %v540_v63  ;;  %v653_v5 = vpop.f32.mrb[9].mxu0  ;;  %2716 = vmatpush3.bf16.msra.mxu1 %v2713_v61  ;;  %v716_v61 = vld [vmem:[%s3943_s3 + $0x40] sm:$0xff]  ;;  %v718_v63 = vld [vmem:[%s3943_s3 + $0x50] sm:$0xff] }
 0x120   : > { %v2717_v6 = vpack.c.bf16 %v699_v0, %v698_v2  ;;  %v654_v7 = vadd.f32 %v653_v5, %v539_v1  ;;  %v719_v0 = vld [vmem:[%s3943_s3 + $0x58] sm:$0xff]  ;;  %v720_v1 = vld [vmem:[%s3943_s3 + $0x60] sm:$0xff]  ;;  %v721_v2 = vld [vmem:[%s3943_s3 + $0x68] sm:$0xff] }
 0x121   : > { %v701_v9 = vmax.f32 %v659_v4, 0.0  ;;  %v722_v3 = vld [vmem:[%s3943_s3 + $0x70] sm:$0xff]  ;;  %v723_v4 = vld [vmem:[%s3943_s3 + $0x78] sm:$0xff] }
 0x122   : > { %v700_v11 = vmax.f32 %v654_v7, 0.0  ;;  %v2288_v12 = vpop.f32.mrb[10].mxu0  ;;  %2718 = vmatprep.subr.bf16.mxu1 %v2717_v6  ;;  %v919_v5 = vld [vmem:[%s3070_s18 + $0x70] sm:$0xff] }
 0x123   : > { %v669_v13 = vadd.f32 %v2288_v12, %v542_v8  ;;  %v663_v14 = vpop.f32.mrb[11].mxu0  ;;  %2720 = vmatpush3.bf16.msra.mxu1 %v2717_v6  ;;  %v920_v6 = vld [vmem:[%s3070_s18 + $0x78] sm:$0xff]  ;;  %v869_v8 = vlaneseq }
 0x124   : > { %v2721_v15 = vpack.c.bf16 %v701_v9, %v700_v11  ;;  %v664_v19 = vadd.f32 %v663_v14, %v541_v10  ;;  %v2765_v7 = vpack.c.bf16 %v920_v6, %v919_v5  ;;  %v3436_v11 = vld [vmem:[%s3065_s15] sm:$0xff] }
 0x125   : > { %v703_v24 = vmax.f32 %v669_v13, 0.0  ;;  %v3430_v9 = vshrl.u32 %v869_v8, 7 }
 0x126   : > { %v702_v28 = vmax.f32 %v664_v19, 0.0  ;;  %v2291_v31 = vpop.f32.mrb[12].mxu0  ;;  %2722 = vmatprep.subr.bf16.mxu1 %v2721_v15  ;;  %2766 = vmatprep.subr.bf16.mxu0 %v2765_v7 }
 0x127   : > { %v679_v34 = vadd.f32 %v2291_v31, %v544_v21  ;;  %v673_v37 = vpop.f32.mrb[13].mxu0  ;;  %2724 = vmatpush3.bf16.msra.mxu1 %v2721_v15  ;;  %2768 = vmatpush3.bf16.msra.mxu0 %v2765_v7  ;;  %v3433_v10 = vsub.s32 0, %v3430_v9 }
 0x128   : > { %v2725_v40 = vpack.c.bf16 %v703_v24, %v702_v28  ;;  %v674_v41 = vadd.f32 %v673_v37, %v543_v25 }
 0x129   : > { %v705_v43 = vmax.f32 %v679_v34, 0.0  ;;  %v872_v12 = vrot.slane %v3436_v11, %v3433_v10 }
 0x12a   : > { %v704_v45 = vmax.f32 %v674_v41, 0.0  ;;  %v2294_v46 = vpop.f32.mrb[14].mxu0  ;;  %2726 = vmatprep.subr.bf16.mxu1 %v2725_v40 }
 0x12b   : > { %v689_v47 = vadd.f32 %v2294_v46, %v546_v42  ;;  %v683_v48 = vpop.f32.mrb[15].mxu0  ;;  %2728 = vmatpush3.bf16.msra.mxu1 %v2725_v40  ;;  %v873_v13 = vmul.f32 %v872_v12, %v3177_v16  ;;  %v874_v14 = vmul.f32 %v872_v12, %v3182_v17  ;;  %v875_v24 = vmul.f32 %v872_v12, %v3187_v18 }
 0x12c   : > { %v2729_v49 = vpack.c.bf16 %v705_v43, %v704_v45  ;;  %v684_v50 = vadd.f32 %v683_v48, %v545_v44  ;;  %v876_v28 = vmul.f32 %v872_v12, %v3194_v20  ;;  %v877_v40 = vmul.f32 %v872_v12, %v3201_v22 }
 0x12d   : > { %v707_v51 = vmax.f32 %v689_v47, 0.0  ;;  %v878_v16 = vmul.f32 %v872_v12, %v3206_v23  ;;  %v879_v18 = vmul.f32 %v872_v12, %v3216_v26  ;;  %v880_v20 = vmul.f32 %v872_v12, %v3221_v27 }
 0x12e   : > { %v706_v52 = vmax.f32 %v684_v50, 0.0  ;;  %2730 = vmatprep.subr.bf16.mxu1 %v2729_v49  ;;  %v881_v22 = vmul.f32 %v872_v12, %v3228_v29  ;;  %v882_v23 = vmul.f32 %v872_v12, %v3233_v30  ;;  %v883_v26 = vmul.f32 %v872_v12, %v3240_v32 }
 0x12f   : > { %2732 = vmatpush3.bf16.msra.mxu1 %v2729_v49  ;;  %v884_v27 = vmul.f32 %v872_v12, %v3245_v33  ;;  %v885_v29 = vmul.f32 %v872_v12, %v3252_v35  ;;  %v886_v30 = vmul.f32 %v872_v12, %v3257_v36  ;;  %v887_v32 = vmul.f32 %v872_v12, %v3264_v38 }
 0x130   : > { %v2733_v53 = vpack.c.bf16 %v707_v51, %v706_v52  ;;  %v888_v33 = vmul.f32 %v872_v12, %v3269_v39  ;;  %v2973_v35 = vmov 0.0|0.0   ;;  %v2975_v36 = vmov 0.0  }
 0x131   : > { %2793 = vmatprep.subr.bf16.mxu0 %v2973_v35  ;;  %v923_v38 = vsub.s32 1, %v3430_v9 }
 0x132   : > { %2734 = vmatprep.subr.bf16.mxu1 %v2733_v53 }
 0x133   : > { %2736 = vmatpush3.bf16.msra.mxu1 %v2733_v53  ;;  %v924_v39 = vrot.slane %v3436_v11, %v923_v38 }
 0x134   : > { %2769 = vmatprep.subr.bf16.mxu1 %v2973_v35 }
 0x136   : > { %2328 = vmatmul.mubr.f32.vlgmr.msra.gmra.mrb[0].mxu1 %v709_v54 }
 0x137   : > { %2330 = vmatprep.mubr.f32.mxu1 %v710_v55 }
 0x13a   : > { %2331 = vmatmul.mubr.f32.gmra.mrb[2].mxu1 %v711_v56 }
 0x13b   : > { %2333 = vmatprep.mubr.f32.mxu1 %v712_v57 }
 0x13e   : > { %2334 = vmatmul.mubr.f32.gmra.mrb[4].mxu1 %v713_v58 }
 0x13f   : > { %2336 = vmatprep.mubr.f32.mxu1 %v714_v59 }
 0x142   : > { %2337 = vmatmul.mubr.f32.gmra.mrb[6].mxu1 %v715_v60 }
 0x143   : > { %2339 = vmatprep.mubr.f32.mxu1 %v716_v61 }
 0x146   : > { %2340 = vmatmul.mubr.f32.gmra.mrb[8].mxu1 %v717_v62 }
 0x147   : > { %2342 = vmatprep.mubr.f32.mxu1 %v718_v63 }
 0x14a   : > { %2343 = vmatmul.mubr.f32.gmra.mrb[10].mxu1 %v719_v0 }
 0x14b   : > { %2345 = vmatprep.mubr.f32.mxu1 %v720_v1 }
 0x14e   : > { %2346 = vmatmul.mubr.f32.gmra.mrb[12].mxu1 %v721_v2 }
 0x14f   : > { %2348 = vmatprep.mubr.f32.mxu1 %v722_v3 }
 0x152   : > { %2349 = vmatmul.mubr.f32.gmra.mrb[14].mxu1 %v723_v4 }
 0x153   : > { %2439 = vmatprep.mubr.msk.f32.mxu1 %vm2974_vm0, %v2975_v36 }
 0x209   : > { %v2329_v15 = vpop.f32.mrb[0].mxu1 }
 0x20a   : > { %v790_v19 = vpop.f32.mrb[1].mxu1  ;;  %v890_v25 = vadd.f32 %v2329_v15, %v874_v14 }
 0x20b   : > { %v889_v21 = vadd.f32 %v873_v13, %v790_v19 }
 0x20d   : > { %v2332_v31 = vpop.f32.mrb[2].mxu1  ;;  %2383 = vmatprep.mubr.f32.mxu0 %v889_v21 }
 0x20e   : > { %v800_v34 = vpop.f32.mrb[3].mxu1  ;;  %2384 = vmatmul.mubr.f32.vlgmr.msra.gmra.mrb[16].mxu0 %v890_v25  ;;  %v892_v41 = vadd.f32 %v2332_v31, %v876_v28 }
 0x20f   : > { %v891_v37 = vadd.f32 %v875_v24, %v800_v34 }
 0x211   : > { %v2335_v42 = vpop.f32.mrb[4].mxu1  ;;  %2386 = vmatprep.mubr.f32.mxu0 %v891_v37 }
 0x212   : > { %v810_v17 = vpop.f32.mrb[5].mxu1  ;;  %2387 = vmatmul.mubr.f32.gmra.mrb[18].mxu0 %v892_v41  ;;  %v894_v44 = vadd.f32 %v2335_v42, %v878_v16 }
 0x213   : > { %v893_v43 = vadd.f32 %v877_v40, %v810_v17 }
 0x215   : > { %v2338_v45 = vpop.f32.mrb[6].mxu1  ;;  %2389 = vmatprep.mubr.f32.mxu0 %v893_v43 }
 0x216   : > { %v820_v46 = vpop.f32.mrb[7].mxu1  ;;  %2390 = vmatmul.mubr.f32.gmra.mrb[20].mxu0 %v894_v44  ;;  %v896_v48 = vadd.f32 %v2338_v45, %v880_v20 }
 0x217   : > { %v895_v47 = vadd.f32 %v879_v18, %v820_v46 }
 0x219   : > { %v2341_v49 = vpop.f32.mrb[8].mxu1  ;;  %2392 = vmatprep.mubr.f32.mxu0 %v895_v47 }
 0x21a   : > { %v830_v50 = vpop.f32.mrb[9].mxu1  ;;  %2393 = vmatmul.mubr.f32.gmra.mrb[22].mxu0 %v896_v48  ;;  %v898_v52 = vadd.f32 %v2341_v49, %v882_v23 }
 0x21b   : > { %v897_v51 = vadd.f32 %v881_v22, %v830_v50 }
 0x21d   : > { %v2344_v53 = vpop.f32.mrb[10].mxu1  ;;  %2395 = vmatprep.mubr.f32.mxu0 %v897_v51 }
 0x21e   : > { %v840_v54 = vpop.f32.mrb[11].mxu1  ;;  %2396 = vmatmul.mubr.f32.gmra.mrb[24].mxu0 %v898_v52  ;;  %v900_v56 = vadd.f32 %v2344_v53, %v884_v27  ;;  %v3510_v27 = vld [vmem:[%s3944_s4] sm:$0xff] }
 0x21f   : > { %v899_v55 = vadd.f32 %v883_v26, %v840_v54  ;;  %v1324_v53 = vld [vmem:[%s3075_s21] sm:$0xff]  ;;  %v1325_v54 = vld [vmem:[%s3075_s21 + $0x8] sm:$0xff] }
 0x221   : > { %v2347_v57 = vpop.f32.mrb[12].mxu1  ;;  %2398 = vmatprep.mubr.f32.mxu0 %v899_v55  ;;  %v1326_v55 = vld [vmem:[%s3075_s21 + $0x10] sm:$0xff] }
 0x222   : > { %v850_v58 = vpop.f32.mrb[13].mxu1  ;;  %2399 = vmatmul.mubr.f32.gmra.mrb[26].mxu0 %v900_v56  ;;  %v902_v60 = vadd.f32 %v2347_v57, %v886_v30  ;;  %v1327_v56 = vld [vmem:[%s3075_s21 + $0x18] sm:$0xff] }
 0x223   : > { %v901_v59 = vadd.f32 %v885_v29, %v850_v58  ;;  %v2817_v29 = vpack.c.bf16 %v1325_v54, %v1324_v53  ;;  %v2821_v30 = vpack.c.bf16 %v1327_v56, %v1326_v55  ;;  %v1334_v53 = vld [vmem:[%s3075_s21 + $0x50] sm:$0xff]  ;;  %v1335_v54 = vld [vmem:[%s3075_s21 + $0x58] sm:$0xff]  ;;  %v1337_v56 = vld [vmem:[%s3075_s21 + $0x68] sm:$0xff] }
 0x224   : > { %v2837_v55 = vpack.c.bf16 %v1335_v54, %v1334_v53 }
 0x225   : > { %v2350_v61 = vpop.f32.mrb[14].mxu1  ;;  %2401 = vmatprep.mubr.f32.mxu0 %v901_v59 }
 0x226   : > { %v860_v62 = vpop.f32.mrb[15].mxu1  ;;  %2402 = vmatmul.mubr.f32.gmra.mrb[28].mxu0 %v902_v60  ;;  %v904_v0 = vadd.f32 %v2350_v61, %v888_v33 }
 0x227   : > { %v903_v63 = vadd.f32 %v887_v32, %v860_v62 }
 0x229   : > { %2404 = vmatprep.mubr.f32.mxu0 %v903_v63 }
 0x22a   : > { %2405 = vmatmul.mubr.f32.gmra.mrb[30].mxu0 %v904_v0 }
 0x22b   : > { %2474 = vmatprep.mubr.msk.f32.mxu0 %vm2974_vm0, %v2975_v36 }
 0x2e1   : > { %v2385_v1 = vpop.f32.mrb[16].mxu0 }
 0x2e2   : > { %v3464_v2 = vadd.f32 %v2385_v1, %v924_v39  ;;  %v991_v3 = vpop.f32.mrb[17].mxu0 }
 0x2e3   : > { %v3466_v4 = vadd.f32 %v991_v3, %v924_v39 }
 0x2e5   : > { %v2770_v5 = vpack.c.bf16 %v3464_v2, %v3466_v4  ;;  %v2388_v6 = vpop.f32.mrb[18].mxu0 }
 0x2e6   : > { %v3470_v7 = vadd.f32 %v2388_v6, %v924_v39  ;;  %v1001_v8 = vpop.f32.mrb[19].mxu0 }
 0x2e7   : > { %v3472_v12 = vadd.f32 %v1001_v8, %v924_v39  ;;  %2771 = vmatpush3.bf16.msra.mxu1 %v2770_v5 }
 0x2e8   : > { %2772 = vmatprep.subr.bf16.mxu1 %v2973_v35 }
 0x2e9   : > { %v2773_v13 = vpack.c.bf16 %v3470_v7, %v3472_v12  ;;  %v2391_v14 = vpop.f32.mrb[20].mxu0 }
 0x2ea   : > { %v3477_v15 = vadd.f32 %v2391_v14, %v924_v39  ;;  %v1011_v19 = vpop.f32.mrb[21].mxu0 }
 0x2eb   : > { %v1012_v21 = vadd.f32 %v1011_v19, %v924_v39  ;;  %2774 = vmatpush3.bf16.msra.mxu1 %v2773_v13 }
 0x2ec   : > { %2775 = vmatprep.subr.bf16.mxu1 %v2973_v35 }
 0x2ed   : > { %v2776_v24 = vpack.c.bf16 %v3477_v15, %v1012_v21  ;;  %v2394_v25 = vpop.f32.mrb[22].mxu0 }
 0x2ee   : > { %v3481_v28 = vadd.f32 %v2394_v25, %v924_v39  ;;  %v1021_v31 = vpop.f32.mrb[23].mxu0 }
 0x2ef   : > { %v1022_v34 = vadd.f32 %v1021_v31, %v924_v39  ;;  %2777 = vmatpush3.bf16.msra.mxu1 %v2776_v24 }
 0x2f0   : > { %2778 = vmatprep.subr.bf16.mxu1 %v2973_v35 }
 0x2f1   : > { %v2779_v37 = vpack.c.bf16 %v3481_v28, %v1022_v34  ;;  %v2397_v40 = vpop.f32.mrb[24].mxu0 }
 0x2f2   : > { %v3485_v41 = vadd.f32 %v2397_v40, %v924_v39  ;;  %v1031_v16 = vpop.f32.mrb[25].mxu0 }
 0x2f3   : > { %v3487_v42 = vadd.f32 %v1031_v16, %v924_v39  ;;  %2780 = vmatpush3.bf16.msra.mxu1 %v2779_v37 }
 0x2f4   : > { %2781 = vmatprep.subr.bf16.mxu1 %v2973_v35 }
 0x2f5   : > { %v2782_v17 = vpack.c.bf16 %v3485_v41, %v3487_v42  ;;  %v2400_v43 = vpop.f32.mrb[26].mxu0 }
 0x2f6   : > { %v3492_v18 = vadd.f32 %v2400_v43, %v924_v39  ;;  %v1041_v44 = vpop.f32.mrb[27].mxu0 }
 0x2f7   : > { %v3494_v20 = vadd.f32 %v1041_v44, %v924_v39  ;;  %2783 = vmatpush3.bf16.msra.mxu1 %v2782_v17 }
 0x2f8   : > { %2784 = vmatprep.subr.bf16.mxu1 %v2973_v35 }
 0x2f9   : > { %v2785_v45 = vpack.c.bf16 %v3492_v18, %v3494_v20  ;;  %v2403_v46 = vpop.f32.mrb[28].mxu0 }
 0x2fa   : > { %v3499_v47 = vadd.f32 %v2403_v46, %v924_v39  ;;  %v1051_v22 = vpop.f32.mrb[29].mxu0 }
 0x2fb   : > { %v1052_v48 = vadd.f32 %v1051_v22, %v924_v39  ;;  %2786 = vmatpush3.bf16.msra.mxu1 %v2785_v45  ;;  %v1329_v22 = vld [vmem:[%s3075_s21 + $0x28] sm:$0xff] }
 0x2fc   : > { %2787 = vmatprep.subr.bf16.mxu1 %v2973_v35 }
 0x2fd   : > { %v2788_v23 = vpack.c.bf16 %v3499_v47, %v1052_v48  ;;  %v2406_v49 = vpop.f32.mrb[30].mxu0 }
 0x2fe   : > { %v3503_v50 = vadd.f32 %v2406_v49, %v924_v39  ;;  %v1061_v51 = vpop.f32.mrb[31].mxu0  ;;  %v1331_v49 = vld [vmem:[%s3075_s21 + $0x38] sm:$0xff] }
 0x2ff   : > { %v1062_v26 = vadd.f32 %v1061_v51, %v924_v39  ;;  %2789 = vmatpush3.bf16.msra.mxu1 %v2788_v23  ;;  %v1330_v23 = vld [vmem:[%s3075_s21 + $0x30] sm:$0xff]  ;;  %v1332_v51 = vld [vmem:[%s3075_s21 + $0x40] sm:$0xff] }
 0x300   : > { %2790 = vmatprep.subr.bf16.mxu1 %v2973_v35 }
 0x301   : > { %v2791_v52 = vpack.c.bf16 %v3503_v50, %v1062_v26 }
 0x303   : > { %2792 = vmatpush3.bf16.msra.mxu1 %v2791_v52 }
 0x304   : > { %2818 = vmatprep.subr.bf16.mxu1 %v2817_v29 }
 0x306   : > { %2440 = vmatmul.mubr.f32.vlgmr.msra.gmra.mrb[16].mxu1 %v3510_v27 }
 0x307   : > { %2820 = vmatpush3.bf16.msra.mxu1 %v2817_v29  ;;  %v1336_v29 = vld [vmem:[%s3075_s21 + $0x60] sm:$0xff] }
 0x308   : > { %2822 = vmatprep.subr.bf16.mxu1 %v2821_v30 }
 0x30b   : > { %2824 = vmatpush3.bf16.msra.mxu1 %v2821_v30  ;;  %v2841_v30 = vpack.c.bf16 %v1337_v56, %v1336_v29 }
 0x3d9   : > { %v1136_v57 = vpop.f32.mrb[16].mxu1 }
 0x3da   : > { %v1143_v58 = vrot.slane %v1136_v57, %v3433_v10  ;;  %v2441_v59 = vpop.f32.mrb[17].mxu1  ;;  %v1338_v57 = vld [vmem:[%s3075_s21 + $0x70] sm:$0xff] }
 0x3dc   : > { %v3519_v32 = vsub.f32 %v3466_v4, %v1143_v58  ;;  %v3522_v60 = vsub.f32 %v3464_v2, %v1143_v58  ;;  %v3525_v33 = vsub.f32 %v3472_v12, %v1143_v58  ;;  %v3528_v61 = vsub.f32 %v3470_v7, %v1143_v58 }
 0x3dd   : > { %v3534_v0 = vsub.f32 %v1012_v21, %v1143_v58  ;;  %v3541_v2 = vsub.f32 %v3477_v15, %v1143_v58  ;;  %v3544_v3 = vsub.f32 %v1022_v34, %v1143_v58  ;;  %v3547_v4 = vsub.f32 %v3481_v28, %v1143_v58 }
 0x3de   : > { %v1160_v62 = vmul.f32 %v3519_v32, %v3519_v32  ;;  %v1161_v63 = vmul.f32 %v3522_v60, %v3522_v60  ;;  %v1162_v39 = vmul.f32 %v3525_v33, %v3525_v33  ;;  %v1163_v1 = vmul.f32 %v3528_v61, %v3528_v61 }
 0x3df   : > { %v1164_v6 = vmul.f32 %v3534_v0, %v3534_v0  ;;  %v1165_v7 = vmul.f32 %v3541_v2, %v3541_v2  ;;  %v1166_v8 = vmul.f32 %v3544_v3, %v3544_v3  ;;  %v1167_v12 = vmul.f32 %v3547_v4, %v3547_v4 }
 0x3e0   : > { %v2794_v38 = vpack.c.bf16 %v1161_v63, %v1160_v62  ;;  %v2797_v5 = vpack.c.bf16 %v1163_v1, %v1162_v39  ;;  %v3559_v14 = vsub.f32 %v3487_v42, %v1143_v58  ;;  %v3562_v15 = vsub.f32 %v3485_v41, %v1143_v58 }
 0x3e1   : > { %v2800_v13 = vpack.c.bf16 %v1165_v7, %v1164_v6  ;;  %v2803_v19 = vpack.c.bf16 %v1167_v12, %v1166_v8  ;;  %v3570_v25 = vsub.f32 %v3494_v20, %v1143_v58  ;;  %v3573_v28 = vsub.f32 %v3492_v18, %v1143_v58 }
 0x3e2   : > { %2795 = vmatpush3.bf16.msra.mxu0 %v2794_v38  ;;  %v1168_v21 = vmul.f32 %v3559_v14, %v3559_v14  ;;  %v1169_v24 = vmul.f32 %v3562_v15, %v3562_v15  ;;  %v3576_v31 = vsub.f32 %v1052_v48, %v1143_v58  ;;  %v3583_v41 = vsub.f32 %v3499_v47, %v1143_v58  ;;  %v1328_v47 = vld [vmem:[%s3075_s21 + $0x20] sm:$0xff] }
 0x3e3   : > { %2796 = vmatprep.subr.bf16.mxu0 %v2973_v35  ;;  %v1170_v37 = vmul.f32 %v3570_v25, %v3570_v25  ;;  %v1171_v40 = vmul.f32 %v3573_v28, %v3573_v28  ;;  %v3586_v16 = vsub.f32 %v1062_v26, %v1143_v58  ;;  %v3593_v18 = vsub.f32 %v3503_v50, %v1143_v58  ;;  %v1333_v26 = vld [vmem:[%s3075_s21 + $0x48] sm:$0xff]  ;;  %v1339_v58 = vld [vmem:[%s3075_s21 + $0x78] sm:$0xff] }
 0x3e4   : > { %v2806_v34 = vpack.c.bf16 %v1169_v24, %v1168_v21  ;;  %v1172_v17 = vmul.f32 %v3576_v31, %v3576_v31  ;;  %v1173_v43 = vmul.f32 %v3583_v41, %v3583_v41  ;;  %v2825_v48 = vpack.c.bf16 %v1329_v22, %v1328_v47 }
 0x3e5   : > { %v2809_v42 = vpack.c.bf16 %v1171_v40, %v1170_v37  ;;  %v1174_v20 = vmul.f32 %v3586_v16, %v3586_v16  ;;  %v1175_v45 = vmul.f32 %v3593_v18, %v3593_v18  ;;  %v2829_v50 = vpack.c.bf16 %v1331_v49, %v1330_v23 }
 0x3e6   : > { %2798 = vmatpush3.bf16.msra.mxu0 %v2797_v5  ;;  %v2812_v44 = vpack.c.bf16 %v1173_v43, %v1172_v17  ;;  %2826 = vmatprep.subr.bf16.mxu1 %v2825_v48  ;;  %v2833_v52 = vpack.c.bf16 %v1333_v26, %v1332_v51  ;;  %v2845_v59 = vpack.c.bf16 %v1339_v58, %v1338_v57  ;;  %v1270_v39 = vsub.s32 2, %v3430_v9 }
 0x3e7   : > { %2799 = vmatprep.subr.bf16.mxu0 %v2973_v35  ;;  %v2815_v46 = vpack.c.bf16 %v1175_v45, %v1174_v20  ;;  %2828 = vmatpush3.bf16.msra.mxu1 %v2825_v48  ;;  %v1290_v1 = vsub.s32 3, %v3430_v9 }
 0x3e8   : > { %2830 = vmatprep.subr.bf16.mxu1 %v2829_v50  ;;  %v3624_v7 = vrot.slane %v3436_v11, %v1270_v39 }
 0x3e9   : > { %v3627_v8 = vrot.slane %v3436_v11, %v1290_v1 }
 0x3ea   : > { %2801 = vmatpush3.bf16.msra.mxu0 %v2800_v13 }
 0x3eb   : > { %2802 = vmatprep.subr.bf16.mxu0 %v2973_v35  ;;  %2832 = vmatpush3.bf16.msra.mxu1 %v2829_v50 }
 0x3ec   : > { %2834 = vmatprep.subr.bf16.mxu1 %v2833_v52 }
 0x3ee   : > { %2804 = vmatpush3.bf16.msra.mxu0 %v2803_v19 }
 0x3ef   : > { %2805 = vmatprep.subr.bf16.mxu0 %v2973_v35  ;;  %2836 = vmatpush3.bf16.msra.mxu1 %v2833_v52 }
 0x3f0   : > { %2838 = vmatprep.subr.bf16.mxu1 %v2837_v55 }
 0x3f2   : > { %2807 = vmatpush3.bf16.msra.mxu0 %v2806_v34 }
 0x3f3   : > { %2808 = vmatprep.subr.bf16.mxu0 %v2973_v35  ;;  %2840 = vmatpush3.bf16.msra.mxu1 %v2837_v55 }
 0x3f4   : > { %2842 = vmatprep.subr.bf16.mxu1 %v2841_v30 }
 0x3f6   : > { %2810 = vmatpush3.bf16.msra.mxu0 %v2809_v42 }
 0x3f7   : > { %2811 = vmatprep.subr.bf16.mxu0 %v2973_v35  ;;  %2844 = vmatpush3.bf16.msra.mxu1 %v2841_v30 }
 0x3f8   : > { %2846 = vmatprep.subr.bf16.mxu1 %v2845_v59 }
 0x3fa   : > { %2813 = vmatpush3.bf16.msra.mxu0 %v2812_v44 }
 0x3fb   : > { %2814 = vmatprep.subr.bf16.mxu0 %v2973_v35  ;;  %2848 = vmatpush3.bf16.msra.mxu1 %v2845_v59 }
 0x3fc   : > { %2873 = vmatprep.subr.bf16.mxu1 %v2973_v35 }
 0x3fe   : > { %2816 = vmatpush3.bf16.msra.mxu0 %v2815_v46 }
 0x3ff   : > { %2849 = vmatprep.subr.bf16.mxu0 %v2973_v35 }
 0x401   : > { %2475 = vmatmul.mubr.f32.vlgmr.msra.gmra.mrb[32].mxu0 %v3510_v27 }
 0x402   : > { %2565 = vmatprep.mubr.msk.f32.mxu0 %vm2974_vm0, %v2975_v36 }
 0x4d4   : > { %v1242_v62 = vpop.f32.mrb[32].mxu0 }
 0x4d5   : > { %v1246_v63 = vadd.f32 1e-05, %v1242_v62  ;;  %v2476_v38 = vpop.f32.mrb[33].mxu0 }
 0x4d7   : > { %2960 = vrsqrt.f32 %v1246_v63 }
 0x4e1   : > { %v2961_v5 = vpop.eup %2960 }
 0x4e2   : > { %v3621_v6 = vrot.slane %v2961_v5, %v3433_v10 }
 0x4e4   : > { %v1252_v12 = vmul.f32 %v3621_v6, %v3519_v32  ;;  %v1253_v13 = vmul.f32 %v3621_v6, %v3522_v60  ;;  %v1254_v19 = vmul.f32 %v3621_v6, %v3525_v33  ;;  %v1255_v21 = vmul.f32 %v3621_v6, %v3528_v61 }
 0x4e5   : > { %v1256_v24 = vmul.f32 %v3621_v6, %v3534_v0  ;;  %v1257_v60 = vmul.f32 %v3621_v6, %v3541_v2  ;;  %v1258_v33 = vmul.f32 %v3621_v6, %v3544_v3  ;;  %v1259_v2 = vmul.f32 %v3621_v6, %v3547_v4 }
 0x4e6   : > { %v1272_v34 = vmul.f32 %v3624_v7, %v1252_v12  ;;  %v1273_v37 = vmul.f32 %v3624_v7, %v1253_v13  ;;  %v1274_v40 = vmul.f32 %v3624_v7, %v1254_v19  ;;  %v1275_v32 = vmul.f32 %v3624_v7, %v1255_v21 }
 0x4e7   : > { %v1276_v17 = vmul.f32 %v3624_v7, %v1256_v24  ;;  %v1277_v45 = vmul.f32 %v3624_v7, %v1257_v60  ;;  %v1278_v47 = vmul.f32 %v3624_v7, %v1258_v33  ;;  %v1260_v22 = vmul.f32 %v3621_v6, %v3559_v14 }
 0x4e8   : > { %v1292_v42 = vadd.f32 %v3627_v8, %v1272_v34  ;;  %v1293_v61 = vadd.f32 %v3627_v8, %v1273_v37  ;;  %v1294_v0 = vadd.f32 %v3627_v8, %v1274_v40  ;;  %v1295_v20 = vadd.f32 %v3627_v8, %v1275_v32 }
 0x4e9   : > { %v1296_v3 = vadd.f32 %v3627_v8, %v1276_v17  ;;  %v1297_v23 = vadd.f32 %v3627_v8, %v1277_v45  ;;  %v1279_v49 = vmul.f32 %v3624_v7, %v1259_v2  ;;  %v1261_v50 = vmul.f32 %v3621_v6, %v3562_v15 }
 0x4ea   : > { %v1308_v43 = vmax.f32 %v1292_v42, 0.0  ;;  %v1309_v44 = vmax.f32 %v1293_v61, 0.0  ;;  %v1310_v46 = vmax.f32 %v1294_v0, 0.0  ;;  %v1311_v48 = vmax.f32 %v1295_v20, 0.0 }
 0x4eb   : > { %v1312_v4 = vmax.f32 %v1296_v3, 0.0  ;;  %v1298_v51 = vadd.f32 %v3627_v8, %v1278_v47  ;;  %v1280_v26 = vmul.f32 %v3624_v7, %v1260_v22  ;;  %v1262_v52 = vmul.f32 %v3621_v6, %v3570_v25 }
 0x4ec   : > { %2509 = vmatprep.mubr.f32.mxu1 %v1308_v43  ;;  %v1313_v14 = vmax.f32 %v1297_v23, 0.0  ;;  %v1299_v53 = vadd.f32 %v3627_v8, %v1279_v49  ;;  %v1281_v54 = vmul.f32 %v3624_v7, %v1261_v50  ;;  %v1263_v55 = vmul.f32 %v3621_v6, %v3573_v28 }
 0x4ed   : > { %2510 = vmatmul.mubr.f32.vlgmr.msra.gmra.mrb[18].mxu1 %v1309_v44  ;;  %v1314_v29 = vmax.f32 %v1298_v51, 0.0  ;;  %v1300_v15 = vadd.f32 %v3627_v8, %v1280_v26  ;;  %v1282_v56 = vmul.f32 %v3624_v7, %v1262_v52  ;;  %v1264_v30 = vmul.f32 %v3621_v6, %v3576_v31 }
 0x4ee   : > { %2512 = vmatprep.mubr.f32.mxu1 %v1310_v46  ;;  %v1315_v25 = vmax.f32 %v1299_v53, 0.0  ;;  %v1301_v57 = vadd.f32 %v3627_v8, %v1281_v54  ;;  %v1283_v58 = vmul.f32 %v3624_v7, %v1263_v55  ;;  %v1265_v59 = vmul.f32 %v3621_v6, %v3583_v41 }
 0x4ef   : > { %v1316_v62 = vmax.f32 %v1300_v15, 0.0  ;;  %v1302_v28 = vadd.f32 %v3627_v8, %v1282_v56  ;;  %v1284_v63 = vmul.f32 %v3624_v7, %v1264_v30  ;;  %v1266_v38 = vmul.f32 %v3621_v6, %v3586_v16 }
 0x4f0   : > { %v1317_v31 = vmax.f32 %v1301_v57, 0.0  ;;  %v1303_v39 = vadd.f32 %v3627_v8, %v1283_v58  ;;  %v1285_v1 = vmul.f32 %v3624_v7, %v1265_v59  ;;  %v1267_v5 = vmul.f32 %v3621_v6, %v3593_v18 }
 0x4f1   : > { %2513 = vmatmul.mubr.f32.gmra.mrb[20].mxu1 %v1311_v48  ;;  %v1318_v12 = vmax.f32 %v1302_v28, 0.0  ;;  %v1304_v41 = vadd.f32 %v3627_v8, %v1284_v63  ;;  %v1286_v13 = vmul.f32 %v3624_v7, %v1266_v38  ;;  %v1342_v32 = vsub.s32 4, %v3430_v9 }
 0x4f2   : > { %2515 = vmatprep.mubr.f32.mxu1 %v1312_v4  ;;  %v1319_v19 = vmax.f32 %v1303_v39, 0.0  ;;  %v1305_v16 = vadd.f32 %v3627_v8, %v1285_v1  ;;  %v1287_v21 = vmul.f32 %v3624_v7, %v1267_v5 }
 0x4f3   : > { %v1320_v24 = vmax.f32 %v1304_v41, 0.0  ;;  %v1306_v34 = vadd.f32 %v3627_v8, %v1286_v13  ;;  %v1343_v7 = vrot.slane %v3436_v11, %v1342_v32 }
 0x4f4   : > { %v1321_v37 = vmax.f32 %v1305_v16, 0.0  ;;  %v1307_v18 = vadd.f32 %v3627_v8, %v1287_v21 }
 0x4f5   : > { %2516 = vmatmul.mubr.f32.gmra.mrb[22].mxu1 %v1313_v14  ;;  %v1322_v6 = vmax.f32 %v1306_v34, 0.0 }
 0x4f6   : > { %2518 = vmatprep.mubr.f32.mxu1 %v1314_v29  ;;  %v1323_v40 = vmax.f32 %v1307_v18, 0.0 }
 0x4f9   : > { %2519 = vmatmul.mubr.f32.gmra.mrb[24].mxu1 %v1315_v25 }
 0x4fa   : > { %2521 = vmatprep.mubr.f32.mxu1 %v1316_v62 }
 0x4fd   : > { %2522 = vmatmul.mubr.f32.gmra.mrb[26].mxu1 %v1317_v31 }
 0x4fe   : > { %2524 = vmatprep.mubr.f32.mxu1 %v1318_v12 }
 0x501   : > { %2525 = vmatmul.mubr.f32.gmra.mrb[28].mxu1 %v1319_v19 }
 0x502   : > { %2527 = vmatprep.mubr.f32.mxu1 %v1320_v24 }
 0x505   : > { %2528 = vmatmul.mubr.f32.gmra.mrb[30].mxu1 %v1321_v37 }
 0x506   : > { %2530 = vmatprep.mubr.f32.mxu1 %v1322_v6 }
 0x509   : > { %2531 = vmatmul.mubr.f32.gmra.mrb[32].mxu1 %v1323_v40 }
 0x50a   : > { %2600 = vmatprep.mubr.msk.f32.mxu1 %vm2974_vm0, %v2975_v36 }
 0x5c0   : > { %v2511_v60 = vpop.f32.mrb[18].mxu1 }
 0x5c1   : > { %v1416_v33 = vadd.f32 %v2511_v60, %v1343_v7  ;;  %v1410_v42 = vpop.f32.mrb[19].mxu1 }
 0x5c2   : > { %v1411_v61 = vadd.f32 %v1410_v42, %v1343_v7 }
 0x5c4   : > { %v2850_v0 = vpack.c.bf16 %v1416_v33, %v1411_v61  ;;  %v2514_v17 = vpop.f32.mrb[20].mxu1 }
 0x5c5   : > { %v1426_v43 = vadd.f32 %v2514_v17, %v1343_v7  ;;  %v1420_v8 = vpop.f32.mrb[21].mxu1 }
 0x5c6   : > { %v1421_v44 = vadd.f32 %v1420_v8, %v1343_v7  ;;  %2851 = vmatpush3.bf16.msra.mxu0 %v2850_v0 }
 0x5c7   : > { %2852 = vmatprep.subr.bf16.mxu0 %v2973_v35 }
 0x5c8   : > { %v2853_v20 = vpack.c.bf16 %v1426_v43, %v1421_v44  ;;  %v2517_v45 = vpop.f32.mrb[22].mxu1 }
 0x5c9   : > { %v1436_v2 = vadd.f32 %v2517_v45, %v1343_v7  ;;  %v1430_v36 = vpop.f32.mrb[23].mxu1 }
 0x5ca   : > { %v1431_v46 = vadd.f32 %v1430_v36, %v1343_v7  ;;  %2854 = vmatpush3.bf16.msra.mxu0 %v2853_v20 }
 0x5cb   : > { %2855 = vmatprep.subr.bf16.mxu0 %v2973_v35 }
 0x5cc   : > { %v2856_v3 = vpack.c.bf16 %v1436_v2, %v1431_v46  ;;  %v2520_v47 = vpop.f32.mrb[24].mxu1 }
 0x5cd   : > { %v1446_v22 = vadd.f32 %v2520_v47, %v1343_v7  ;;  %v1440_v48 = vpop.f32.mrb[25].mxu1 }
 0x5ce   : > { %v1441_v23 = vadd.f32 %v1440_v48, %v1343_v7  ;;  %2857 = vmatpush3.bf16.msra.mxu0 %v2856_v3 }
 0x5cf   : > { %2858 = vmatprep.subr.bf16.mxu0 %v2973_v35 }
 0x5d0   : > { %v2859_v49 = vpack.c.bf16 %v1446_v22, %v1441_v23  ;;  %v2523_v50 = vpop.f32.mrb[26].mxu1 }
 0x5d1   : > { %v1456_v4 = vadd.f32 %v2523_v50, %v1343_v7  ;;  %v1450_v51 = vpop.f32.mrb[27].mxu1 }
 0x5d2   : > { %v1451_v26 = vadd.f32 %v1450_v51, %v1343_v7  ;;  %2860 = vmatpush3.bf16.msra.mxu0 %v2859_v49 }
 0x5d3   : > { %2861 = vmatprep.subr.bf16.mxu0 %v2973_v35 }
 0x5d4   : > { %v2862_v52 = vpack.c.bf16 %v1456_v4, %v1451_v26  ;;  %v2526_v14 = vpop.f32.mrb[28].mxu1 }
 0x5d5   : > { %v1466_v53 = vadd.f32 %v2526_v14, %v1343_v7  ;;  %v1460_v54 = vpop.f32.mrb[29].mxu1 }
 0x5d6   : > { %v1461_v55 = vadd.f32 %v1460_v54, %v1343_v7  ;;  %2863 = vmatpush3.bf16.msra.mxu0 %v2862_v52  ;;  %v1689_v54 = vsub.s32 5, %v3430_v9 }
 0x5d7   : > { %2864 = vmatprep.subr.bf16.mxu0 %v2973_v35 }
 0x5d8   : > { %v2865_v29 = vpack.c.bf16 %v1466_v53, %v1461_v55  ;;  %v2529_v15 = vpop.f32.mrb[30].mxu1 }
 0x5d9   : > { %v1476_v56 = vadd.f32 %v2529_v15, %v1343_v7  ;;  %v1470_v30 = vpop.f32.mrb[31].mxu1 }
 0x5da   : > { %v1471_v25 = vadd.f32 %v1470_v30, %v1343_v7  ;;  %2866 = vmatpush3.bf16.msra.mxu0 %v2865_v29 }
 0x5db   : > { %2867 = vmatprep.subr.bf16.mxu0 %v2973_v35 }
 0x5dc   : > { %v2868_v57 = vpack.c.bf16 %v1476_v56, %v1471_v25  ;;  %v2532_v58 = vpop.f32.mrb[32].mxu1 }
 0x5dd   : > { %v1486_v59 = vadd.f32 %v2532_v58, %v1343_v7  ;;  %v1480_v62 = vpop.f32.mrb[33].mxu1 }
 0x5de   : > { %v1481_v28 = vadd.f32 %v1480_v62, %v1343_v7  ;;  %2869 = vmatpush3.bf16.msra.mxu0 %v2868_v57 }
 0x5df   : > { %2870 = vmatprep.subr.bf16.mxu0 %v2973_v35 }
 0x5e0   : > { %v2871_v63 = vpack.c.bf16 %v1486_v59, %v1481_v28 }
 0x5e2   : > { %2872 = vmatpush3.bf16.msra.mxu0 %v2871_v63 }
 0x5e5   : > { %2566 = vmatmul.mubr.f32.vlgmr.msra.gmra.mrb[34].mxu0 %v3510_v27 }
 0x6b8   : > { %v1555_v38 = vpop.f32.mrb[34].mxu0 }
 0x6b9   : > { %v1562_v31 = vrot.slane %v1555_v38, %v3433_v10  ;;  %v2567_v39 = vpop.f32.mrb[35].mxu0 }
 0x6bb   : > { %v3706_v1 = vsub.f32 %v1411_v61, %v1562_v31  ;;  %v3708_v5 = vsub.f32 %v1416_v33, %v1562_v31  ;;  %v3710_v12 = vsub.f32 %v1421_v44, %v1562_v31  ;;  %v3712_v41 = vsub.f32 %v1426_v43, %v1562_v31 }
 0x6bc   : > { %v3718_v16 = vsub.f32 %v1431_v46, %v1562_v31  ;;  %v1568_v37 = vsub.f32 %v1436_v2, %v1562_v31  ;;  %v1569_v18 = vsub.f32 %v1441_v23, %v1562_v31  ;;  %v1570_v6 = vsub.f32 %v1446_v22, %v1562_v31 }
 0x6bd   : > { %v1579_v13 = vmul.f32 %v3706_v1, %v3706_v1  ;;  %v1580_v19 = vmul.f32 %v3708_v5, %v3708_v5  ;;  %v1581_v24 = vmul.f32 %v3710_v12, %v3710_v12  ;;  %v1582_v34 = vmul.f32 %v3712_v41, %v3712_v41 }
 0x6be   : > { %v1583_v32 = vmul.f32 %v3718_v16, %v3718_v16  ;;  %v1584_v7 = vmul.f32 %v1568_v37, %v1568_v37  ;;  %v1585_v60 = vmul.f32 %v1569_v18, %v1569_v18  ;;  %v1586_v33 = vmul.f32 %v1570_v6, %v1570_v6 }
 0x6bf   : > { %v2874_v21 = vpack.c.bf16 %v1580_v19, %v1579_v13  ;;  %v2877_v40 = vpack.c.bf16 %v1582_v34, %v1581_v24  ;;  %v1571_v61 = vsub.f32 %v1451_v26, %v1562_v31  ;;  %v1572_v0 = vsub.f32 %v1456_v4, %v1562_v31 }
 0x6c0   : > { %v2880_v42 = vpack.c.bf16 %v1584_v7, %v1583_v32  ;;  %v2883_v17 = vpack.c.bf16 %v1586_v33, %v1585_v60  ;;  %v1573_v44 = vsub.f32 %v1461_v55, %v1562_v31  ;;  %v1574_v20 = vsub.f32 %v1466_v53, %v1562_v31 }
 0x6c1   : > { %2875 = vmatpush3.bf16.msra.mxu1 %v2874_v21  ;;  %v1587_v43 = vmul.f32 %v1571_v61, %v1571_v61  ;;  %v1588_v8 = vmul.f32 %v1572_v0, %v1572_v0  ;;  %v1575_v45 = vsub.f32 %v1471_v25, %v1562_v31  ;;  %v1576_v3 = vsub.f32 %v1476_v56, %v1562_v31 }
 0x6c2   : > { %2876 = vmatprep.subr.bf16.mxu1 %v2973_v35  ;;  %v1589_v36 = vmul.f32 %v1573_v44, %v1573_v44  ;;  %v1590_v46 = vmul.f32 %v1574_v20, %v1574_v20  ;;  %v1577_v47 = vsub.f32 %v1481_v28, %v1562_v31  ;;  %v1578_v49 = vsub.f32 %v1486_v59, %v1562_v31 }
 0x6c3   : > { %v2886_v2 = vpack.c.bf16 %v1588_v8, %v1587_v43  ;;  %v1591_v48 = vmul.f32 %v1575_v45, %v1575_v45  ;;  %v1592_v23 = vmul.f32 %v1576_v3, %v1576_v3  ;;  %v1709_v55 = vsub.s32 6, %v3430_v9 }
 0x6c4   : > { %v2889_v22 = vpack.c.bf16 %v1590_v46, %v1589_v36  ;;  %v1593_v4 = vmul.f32 %v1577_v47, %v1577_v47  ;;  %v1594_v51 = vmul.f32 %v1578_v49, %v1578_v49  ;;  %v1690_v56 = vrot.slane %v3436_v11, %v1689_v54 }
 0x6c5   : > { %2878 = vmatpush3.bf16.msra.mxu1 %v2877_v40  ;;  %v2892_v50 = vpack.c.bf16 %v1592_v23, %v1591_v48  ;;  %v1710_v30 = vrot.slane %v3436_v11, %v1709_v55 }
 0x6c6   : > { %2879 = vmatprep.subr.bf16.mxu1 %v2973_v35  ;;  %v2895_v26 = vpack.c.bf16 %v1594_v51, %v1593_v4 }
 0x6c9   : > { %2881 = vmatpush3.bf16.msra.mxu1 %v2880_v42 }
 0x6ca   : > { %2882 = vmatprep.subr.bf16.mxu1 %v2973_v35 }
 0x6cd   : > { %2884 = vmatpush3.bf16.msra.mxu1 %v2883_v17 }
 0x6ce   : > { %2885 = vmatprep.subr.bf16.mxu1 %v2973_v35 }
 0x6d1   : > { %2887 = vmatpush3.bf16.msra.mxu1 %v2886_v2 }
 0x6d2   : > { %2888 = vmatprep.subr.bf16.mxu1 %v2973_v35 }
 0x6d5   : > { %2890 = vmatpush3.bf16.msra.mxu1 %v2889_v22 }
 0x6d6   : > { %2891 = vmatprep.subr.bf16.mxu1 %v2973_v35 }
 0x6d9   : > { %2893 = vmatpush3.bf16.msra.mxu1 %v2892_v50 }
 0x6da   : > { %2894 = vmatprep.subr.bf16.mxu1 %v2973_v35 }
 0x6dd   : > { %2896 = vmatpush3.bf16.msra.mxu1 %v2895_v26 }
 0x6e0   : > { %2601 = vmatmul.mubr.f32.vlgmr.msra.gmra.mrb[34].mxu1 %v3510_v27 }
 0x7b3   : > { %v1661_v52 = vpop.f32.mrb[34].mxu1 }
 0x7b4   : > { %v1665_v14 = vadd.f32 1e-05, %v1661_v52  ;;  %v2602_v53 = vpop.f32.mrb[35].mxu1 }
 0x7b6   : > { %2962 = vrsqrt.f32 %v1665_v14 }
 0x7c0   : > { %v2963_v29 = vpop.eup %2962 }
 0x7c1   : > { %v1670_v15 = vrot.slane %v2963_v29, %v3433_v10 }
 0x7c3   : > { %v1671_v35 = vmul.f32 %v1670_v15, %v3706_v1  ;;  %v1672_v25 = vmul.f32 %v1670_v15, %v3708_v5  ;;  %v1673_v27 = vmul.f32 %v1670_v15, %v3710_v12  ;;  %v1674_v57 = vmul.f32 %v1670_v15, %v3712_v41 }
 0x7c4   : > { %v1675_v58 = vmul.f32 %v1670_v15, %v3718_v16  ;;  %v1676_v59 = vmul.f32 %v1670_v15, %v1568_v37  ;;  %v1677_v62 = vmul.f32 %v1670_v15, %v1569_v18  ;;  %v1678_v9 = vmul.f32 %v1670_v15, %v1570_v6 }
 0x7c5   : > { %v1679_v28 = vmul.f32 %v1670_v15, %v1571_v61  ;;  %v1680_v63 = vmul.f32 %v1670_v15, %v1572_v0  ;;  %v1681_v10 = vmul.f32 %v1670_v15, %v1573_v44  ;;  %v1682_v38 = vmul.f32 %v1670_v15, %v1574_v20 }
 0x7c6   : > { %v1683_v31 = vmul.f32 %v1670_v15, %v1575_v45  ;;  %v1684_v39 = vmul.f32 %v1670_v15, %v1576_v3  ;;  %v1685_v11 = vmul.f32 %v1670_v15, %v1577_v47  ;;  %v1686_v13 = vmul.f32 %v1670_v15, %v1578_v49 }
 0x7c7   : > { %v1691_v1 = vmul.f32 %v1690_v56, %v1671_v35  ;;  %v1692_v19 = vmul.f32 %v1690_v56, %v1672_v25  ;;  %v1693_v5 = vmul.f32 %v1690_v56, %v1673_v27  ;;  %v1694_v21 = vmul.f32 %v1690_v56, %v1674_v57  ;;  %v1841_v25 = vld [vmem:[%s3947_s7] sm:$0xff] (!%p2003_p5)  ;;  %v1842_v57 = vld [vmem:[%s3947_s7 + $0x8] sm:$0xff] (!%p2003_p5) }
 0x7c8   : > { %v1695_v12 = vmul.f32 %v1690_v56, %v1675_v58  ;;  %v1696_v24 = vmul.f32 %v1690_v56, %v1676_v59  ;;  %v1697_v41 = vmul.f32 %v1690_v56, %v1677_v62  ;;  %v1698_v34 = vmul.f32 %v1690_v56, %v1678_v9  ;;  %v1834_v59 = vld [vmem:[%s3946_s6] sm:$0xff] (!%p2003_p5)  ;;  %v1843_v62 = vld [vmem:[%s3947_s7 + $0x10] sm:$0xff] (!%p2003_p5)  ;;  %v1844_v9 = vld [vmem:[%s3947_s7 + $0x18] sm:$0xff] (!%p2003_p5) }
 0x7c9   : > { %v1699_v16 = vmul.f32 %v1690_v56, %v1679_v28  ;;  %v1700_v37 = vmul.f32 %v1690_v56, %v1680_v63  ;;  %v1701_v18 = vmul.f32 %v1690_v56, %v1681_v10  ;;  %v1702_v6 = vmul.f32 %v1690_v56, %v1682_v38 }
 0x7ca   : > { %v1703_v40 = vmul.f32 %v1690_v56, %v1683_v31  ;;  %v1704_v32 = vmul.f32 %v1690_v56, %v1684_v39  ;;  %v1705_v7 = vmul.f32 %v1690_v56, %v1685_v11  ;;  %v1706_v60 = vmul.f32 %v1690_v56, %v1686_v13  ;;  %v1845_v39 = vld [vmem:[%s3947_s7 + $0x20] sm:$0xff] (!%p2003_p5)  ;;  %v1846_v11 = vld [vmem:[%s3947_s7 + $0x28] sm:$0xff] (!%p2003_p5) }
 0x7cb   : > { %v1711_v33 = vadd.f32 %v1710_v30, %v1691_v1  ;;  %v1712_v42 = vadd.f32 %v1710_v30, %v1692_v19  ;;  %v1713_v61 = vadd.f32 %v1710_v30, %v1693_v5  ;;  %v1714_v0 = vadd.f32 %v1710_v30, %v1694_v21  ;;  %v1847_v19 = vld [vmem:[%s3947_s7 + $0x30] sm:$0xff] (!%p2003_p5)  ;;  %v1848_v5 = vld [vmem:[%s3947_s7 + $0x38] sm:$0xff] (!%p2003_p5) }
 0x7cc   : > { %v3744_v17 = vadd.f32 %v1710_v30, %v1695_v12  ;;  %v3746_v43 = vadd.f32 %v1710_v30, %v1696_v24  ;;  %v3748_v8 = vadd.f32 %v1710_v30, %v1697_v41  ;;  %v3750_v44 = vadd.f32 %v1710_v30, %v1698_v34  ;;  %v1849_v24 = vld [vmem:[%s3947_s7 + $0x40] sm:$0xff] (!%p2003_p5)  ;;  %v1850_v41 = vld [vmem:[%s3947_s7 + $0x48] sm:$0xff] (!%p2003_p5) }
 0x7cd   : > { %v3752_v20 = vadd.f32 %v1710_v30, %v1699_v16  ;;  %v3754_v45 = vadd.f32 %v1710_v30, %v1700_v37  ;;  %v3756_v2 = vadd.f32 %v1710_v30, %v1701_v18  ;;  %v3758_v36 = vadd.f32 %v1710_v30, %v1702_v6  ;;  %v1851_v37 = vld [vmem:[%s3947_s7 + $0x50] sm:$0xff] (!%p2003_p5)  ;;  %v1852_v18 = vld [vmem:[%s3947_s7 + $0x58] sm:$0xff] (!%p2003_p5) }
 0x7ce   : > { %v3760_v46 = vadd.f32 %v1710_v30, %v1703_v40  ;;  %v3762_v3 = vadd.f32 %v1710_v30, %v1704_v32  ;;  %v3764_v47 = vadd.f32 %v1710_v30, %v1705_v7  ;;  %v3766_v22 = vadd.f32 %v1710_v30, %v1706_v60  ;;  %v1853_v32 = vld [vmem:[%s3947_s7 + $0x60] sm:$0xff] (!%p2003_p5)  ;;  %v1854_v7 = vld [vmem:[%s3947_s7 + $0x68] sm:$0xff] (!%p2003_p5) }
 0x7cf   : > { %v1727_v48 = vmax.f32 %v1711_v33, 0.0  ;;  %v1728_v23 = vmax.f32 %v1712_v42, 0.0  ;;  %v1729_v49 = vmax.f32 %v1713_v61, 0.0  ;;  %v1730_v50 = vmax.f32 %v1714_v0, 0.0  ;;  %v1763_v42 = vld [vmem:[%s3945_s5] sm:$0xff] (!%p2003_p5)  ;;  %v1855_v61 = vld [vmem:[%s3947_s7 + $0x70] sm:$0xff] (!%p2003_p5) }
 0x7d0   : > { %v1731_v4 = vmax.f32 %v3744_v17, 0.0  ;;  %v1732_v51 = vmax.f32 %v3746_v43, 0.0  ;;  %v1733_v26 = vmax.f32 %v3748_v8, 0.0  ;;  %v1734_v52 = vmax.f32 %v3750_v44, 0.0  ;;  %v1856_v0 = vld [vmem:[%s3947_s7 + $0x78] sm:$0xff] (!%p2003_p5) }
 0x7d1   : > { %v1735_v14 = vmax.f32 %v3752_v20, 0.0  ;;  %v1736_v53 = vmax.f32 %v3754_v45, 0.0  ;;  %v1737_v54 = vmax.f32 %v3756_v2, 0.0  ;;  %v1738_v55 = vmax.f32 %v3758_v36, 0.0  ;;  %1743 = vst [vmem:[%s3952_s12] sm:$0xff] %v1727_v48  ;;  %1744 = vst [vmem:[%s3952_s12 + $0x8] sm:$0xff] %v1728_v23 }
 0x7d2   : > { %1745 = vst [vmem:[%s3952_s12 + $0x10] sm:$0xff] %v1729_v49  ;;  %1746 = vst [vmem:[%s3952_s12 + $0x18] sm:$0xff] %v1730_v50  ;;  %v1739_v29 = vmax.f32 %v3760_v46, 0.0  ;;  %v1740_v15 = vmax.f32 %v3762_v3, 0.0  ;;  %v1741_v56 = vmax.f32 %v3764_v47, 0.0  ;;  %v1742_v30 = vmax.f32 %v3766_v22, 0.0 }
 0x7d3   : > { %1747 = vst [vmem:[%s3952_s12 + $0x20] sm:$0xff] %v1731_v4  ;;  %1748 = vst [vmem:[%s3952_s12 + $0x28] sm:$0xff] %v1732_v51  ;;  %1762 = sbr.rel (%p2003_p5) target bundleno = 2465 (0x9a1), region = 76  ;;  %v2898_v35 = vpack.c.bf16 (!%p2003_p5), %v1728_v23, %v1727_v48  ;;  %v2976_v27 = vmov (!%p2003_p5), 0.0|0.0   ;;  %v2901_v58 = vpack.c.bf16 (!%p2003_p5), %v1730_v50, %v1729_v49  ;;  %v2978_v28 = vmov (!%p2003_p5), 0.0  }
 0x7d4   : > { %1749 = vst [vmem:[%s3952_s12 + $0x30] sm:$0xff] %v1733_v26  ;;  %1750 = vst [vmem:[%s3952_s12 + $0x38] sm:$0xff] %v1734_v52  ;;  %2897 = vmatprep.subr.bf16.mxu0 (!%p2003_p5), %v2976_v27  ;;  %2921 = vmatprep.subr.bf16.mxu1 (!%p2003_p5), %v2976_v27  ;;  %v2922_v63 = vpack.c.bf16 (!%p2003_p5), %v1842_v57, %v1841_v25  ;;  %v2979_v10 = vmov (!%p2003_p5), 0   ;;  %v2925_v38 = vpack.c.bf16 (!%p2003_p5), %v1844_v9, %v1843_v62  ;;  %v2004_v45 = vld [vmem:[%s3948_s8] ss:$0 sm:$0xff] (!%p2003_p5) }
 0x7d5   : > { %1751 = vst [vmem:[%s3952_s12 + $0x40] sm:$0xff] %v1735_v14  ;;  %1752 = vst [vmem:[%s3952_s12 + $0x48] sm:$0xff] %v1736_v53  ;;  %2899 = vmatpush3.bf16.msra.mxu0 (!%p2003_p5), %v2898_v35  ;;  %2635 = vmatprep.mubr.msk.f32.mxu0 (!%p2003_p5), %vm2977_vm1, %v2978_v28  ;;  %v2904_v31 = vpack.c.bf16 (!%p2003_p5), %v1732_v51, %v1731_v4  ;;  %v2928_v13 = vpack.c.bf16 (!%p2003_p5), %v1846_v11, %v1845_v39 }
 0x7d6   : > { %1753 = vst [vmem:[%s3952_s12 + $0x50] sm:$0xff] %v1737_v54  ;;  %1754 = vst [vmem:[%s3952_s12 + $0x58] sm:$0xff] %v1738_v55  ;;  %2900 = vmatprep.subr.bf16.mxu0 (!%p2003_p5), %v2976_v27  ;;  %2964 = vset.pattern.permute.xlu0 (!%p2003_p5), %v2979_v10  ;;  %v2907_v1 = vpack.c.bf16 (!%p2003_p5), %v1734_v52, %v1733_v26  ;;  %v2931_v21 = vpack.c.bf16 (!%p2003_p5), %v1848_v5, %v1847_v19 }
 0x7d7   : > { %1755 = vst [vmem:[%s3952_s12 + $0x60] sm:$0xff] %v1739_v29  ;;  %1756 = vst [vmem:[%s3952_s12 + $0x68] sm:$0xff] %v1740_v15  ;;  %2670 = vmatprep.mubr.msk.f32.mxu1 (!%p2003_p5), %vm2977_vm1, %v2978_v28  ;;  %1837 = vperm.xlu0 (!%p2003_p5), %2964, %v1834_v59   ;;  %v2910_v12 = vpack.c.bf16 (!%p2003_p5), %v1736_v53, %v1735_v14  ;;  %v2934_v34 = vpack.c.bf16 (!%p2003_p5), %v1850_v41, %v1849_v24 }
 0x7d8   : > { %1757 = vst [vmem:[%s3952_s12 + $0x70] sm:$0xff] %v1741_v56  ;;  %1758 = vst [vmem:[%s3952_s12 + $0x78] sm:$0xff] %v1742_v30  ;;  %2923 = vmatpush3.bf16.msra.mxu1 (!%p2003_p5), %v2922_v63  ;;  %v2913_v16 = vpack.c.bf16 (!%p2003_p5), %v1738_v55, %v1737_v54  ;;  %v2937_v6 = vpack.c.bf16 (!%p2003_p5), %v1852_v18, %v1851_v37  ;;  %v2916_v40 = vpack.c.bf16 (!%p2003_p5), %v1740_v15, %v1739_v29 }
 0x7d9   : > { %2902 = vmatpush3.bf16.msra.mxu0 (!%p2003_p5), %v2901_v58  ;;  %2924 = vmatprep.subr.bf16.mxu1 (!%p2003_p5), %v2976_v27  ;;  %v2940_v60 = vpack.c.bf16 (!%p2003_p5), %v1854_v7, %v1853_v32  ;;  %v2919_v33 = vpack.c.bf16 (!%p2003_p5), %v1742_v30, %v1741_v56  ;;  %v2943_v17 = vpack.c.bf16 (!%p2003_p5), %v1856_v0, %v1855_v61 }
 0x7da   : > { %2903 = vmatprep.subr.bf16.mxu0 %v2976_v27 }
 0x7dc   : > { %2926 = vmatpush3.bf16.msra.mxu1 %v2925_v38 }
 0x7dd   : > { %2905 = vmatpush3.bf16.msra.mxu0 %v2904_v31  ;;  %2927 = vmatprep.subr.bf16.mxu1 %v2976_v27 }
 0x7de   : > { %2906 = vmatprep.subr.bf16.mxu0 %v2976_v27 }
 0x7e0   : > { %2929 = vmatpush3.bf16.msra.mxu1 %v2928_v13 }
 0x7e1   : > { %2908 = vmatpush3.bf16.msra.mxu0 %v2907_v1  ;;  %2930 = vmatprep.subr.bf16.mxu1 %v2976_v27 }
 0x7e2   : > { %2909 = vmatprep.subr.bf16.mxu0 %v2976_v27 }
 0x7e4   : > { %2932 = vmatpush3.bf16.msra.mxu1 %v2931_v21 }
 0x7e5   : > { %2911 = vmatpush3.bf16.msra.mxu0 %v2910_v12  ;;  %2933 = vmatprep.subr.bf16.mxu1 %v2976_v27 }
 0x7e6   : > { %2912 = vmatprep.subr.bf16.mxu0 %v2976_v27 }
 0x7e8   : > { %2935 = vmatpush3.bf16.msra.mxu1 %v2934_v34 }
 0x7e9   : > { %2914 = vmatpush3.bf16.msra.mxu0 %v2913_v16  ;;  %2936 = vmatprep.subr.bf16.mxu1 %v2976_v27 }
 0x7ea   : > { %2915 = vmatprep.subr.bf16.mxu0 %v2976_v27 }
 0x7ec   : > { %2938 = vmatpush3.bf16.msra.mxu1 %v2937_v6 }
 0x7ed   : > { %2917 = vmatpush3.bf16.msra.mxu0 %v2916_v40  ;;  %2939 = vmatprep.subr.bf16.mxu1 %v2976_v27 }
 0x7ee   : > { %2918 = vmatprep.subr.bf16.mxu0 %v2976_v27 }
 0x7f0   : > { %2941 = vmatpush3.bf16.msra.mxu1 %v2940_v60 }
 0x7f1   : > { %2920 = vmatpush3.bf16.msra.mxu0 %v2919_v33  ;;  %2942 = vmatprep.subr.bf16.mxu1 %v2976_v27 }
 0x7f4   : > { %2636 = vmatmul.mubr.f32.vlgmr.msra.gmra.mrb[0].mxu0 %v1763_v42  ;;  %2944 = vmatpush3.bf16.msra.mxu1 %v2943_v17 }
 0x856   : > { %v1838_v43 = vpop.permute.xlu0 %1837 }
 0x8c7   : > { %v1830_v8 = vpop.f32.mrb[0].mxu0 }
 0x8c8   : > { %v1840_v44 = vmul.f32 %v1838_v43, %v1830_v8  ;;  %v2637_v20 = vpop.f32.mrb[1].mxu0 }
 0x8ca   : > { %2671 = vmatmul.mubr.f32.vlgmr.msra.gmra.mrb[0].mxu1 %v1840_v44 }
 0x99d   : > { %v1930_v2 = vpop.f32.mrb[0].mxu1 }
 0x99e   : > { %v1931_v36 = vadd.f32 %v2004_v45, %v1930_v2  ;;  %v2672_v46 = vpop.f32.mrb[1].mxu1 }
 0x9a0   : > { %1934 = vst [vmem:[%s3953_s13] sm:$0xff] %v1931_v36 }
 0x9a1 PF: > { %s24_s25 = sadd.s32 1, %s2971_s25  }
 0x9a2   : > { %p21_p6 = scmp.ge.s32.totalorder %s24_s25, 5  }
 0x9a4   :  { %23 = sbr.rel (!%p21_p6) target bundleno = 1 (0x1), region = 116 }

</bundles_post_ra>
